<compile_context>
chip_gen: v5e
topology: v5e:2x2
jax: 0.10.0
libtpu: 0.0.40
codegen_flags: <defaults>
</compile_context>

<pallas_src>
import functools

import jax
import jax.numpy as jnp
from jax.experimental import pallas as pl
from jax.experimental.pallas import tpu as pltpu

EPS = 1e-5
LANE = 128

# Tri-state cache: do resident BlockSpecs accept pipeline_mode=pl.Buffered(1)?
_BUFFERED_RESIDENT_OK = [True]


def _round_up(x, m):
    return ((x + m - 1) // m) * m


def _cdiv(a, d):
    return -(-a // d)


def _mxu_rows_target():
    """~MXU row count: 256 on v6e/v7x (256x256 MXU), 128 otherwise."""
    try:
        kind = jax.devices()[0].device_kind.lower()
    except Exception:
        return 128
    if "v6" in kind or "v7" in kind:
        return 256
    return 128


def actor_kernel(x_ref, w1_ref, vec_ref, w2_ref, w3_ref, o_ref, *, f1p, f2p, outp):
    nb, b, s = x_ref.shape

    # Packed (1, 3*f1p + f2p + outp) f32 operand; every slice boundary is a
    # multiple of 128 lanes, so these are cheap aligned window loads.
    b1 = vec_ref[:, 0:f1p]
    gamma = vec_ref[:, f1p:2 * f1p]
    beta = vec_ref[:, 2 * f1p:3 * f1p]
    b2 = vec_ref[:, 3 * f1p:3 * f1p + f2p]
    b3 = vec_ref[:, 3 * f1p + f2p:3 * f1p + f2p + outp]

    # fc1 on the flattened (nb*b, s) block: bf16 MXU matmul, f32 accumulate.
    # The f32 flatten is layout-free for b == 8 (one sublane group per batch).
    x = x_ref[...].reshape(nb * b, s).astype(jnp.bfloat16)
    h1 = jnp.dot(x, w1_ref[...], preferred_element_type=jnp.float32) + b1

    # bn1 (training-mode BatchNorm1d): statistics are PER SUB-BATCH, reduced
    # over axis=1 of the (nb, b, f1p) view -- not over the flattened rows.
    h1 = h1.reshape(nb, b, f1p)
    mu = jnp.mean(h1, axis=1, keepdims=True)
    d = h1 - mu
    var = jnp.mean(d * d, axis=1, keepdims=True)
    a1 = jnp.maximum(d * jax.lax.rsqrt(var + EPS) * gamma + beta, 0.0)

    # fc2 + relu.
    h2 = jnp.dot(a1.reshape(nb * b, f1p).astype(jnp.bfloat16), w2_ref[...],
                 preferred_element_type=jnp.float32) + b2
    a2 = jnp.maximum(h2, 0.0)

    # fc3 + tanh; store as bf16 (lane-dense 128-wide padded output).
    h3 = jnp.dot(a2.astype(jnp.bfloat16), w3_ref[...],
                 preferred_element_type=jnp.float32) + b3
    o_ref[...] = jnp.tanh(h3).reshape(nb, b, outp).astype(o_ref.dtype)


def _resident_spec(shape, use_buffered):
    """BlockSpec for a VMEM-resident operand (constant block index)."""
    index_map = lambda i, _n=len(shape): (0,) * _n
    if use_buffered:
        return pl.BlockSpec(shape, index_map, pipeline_mode=pl.Buffered(1))
    return pl.BlockSpec(shape, index_map)


def actor_forward_stacked(states, kp):
    """states: (N, B, state_size) f32 -> (N, B, action_size) f32.

    Each of the N batches gets its own training-mode BN statistics (same as
    calling the PyTorch module once per batch).  NB batches are blocked per
    grid step so the MXU sees ~128/256 rows per matmul; weights / packed
    vectors use constant index_maps and stay resident in VMEM.
    """
    n, b, s = states.shape
    w1, vec, w2, w3 = kp["w1"], kp["vec"], kp["w2"], kp["w3"]
    f1p, f2p, outp = w1.shape[1], w2.shape[1], w3.shape[1]

    # ---- block sizing: nb sub-batches per step so nb*b ~= MXU rows, while
    # keeping >=2 grid steps when possible (v7x has 2 TensorCores).
    target = _mxu_rows_target()
    nb_max = max(1, target // b)
    steps = max(1, _cdiv(n, nb_max))
    if n >= 2:
        steps = max(steps, 2)
    nb = _cdiv(n, steps)
    n_pad = steps * nb

    states_p = states
    if n_pad != n:
        # Padded (all-zero) sub-batches only ever occupy their own BN group,
        # so real batches are unaffected; their outputs are sliced off below.
        states_p = jnp.pad(states, ((0, n_pad - n), (0, 0), (0, 0)))

    kernel = functools.partial(actor_kernel, f1p=f1p, f2p=f2p, outp=outp)

    rows = n_pad * b
    cost = pl.CostEstimate(
        flops=2 * rows * (s * f1p + f1p * f2p + f2p * outp),
        transcendentals=rows * outp + n_pad * f1p,  # tanh + per-group rsqrt
        bytes_accessed=(states_p.size * states_p.dtype.itemsize
                        + w1.size * w1.dtype.itemsize
                        + w2.size * w2.dtype.itemsize
                        + w3.size * w3.dtype.itemsize
                        + vec.size * vec.dtype.itemsize
                        + rows * outp * 2),
    )

    def run(use_buffered):
        grid_spec = pltpu.PrefetchScalarGridSpec(
            num_scalar_prefetch=0,
            grid=(steps,),
            in_specs=[
                pl.BlockSpec((nb, b, s), lambda i: (i, 0, 0)),       # per-step states
                _resident_spec((s, f1p), use_buffered),              # w1 (resident)
                _resident_spec((1, vec.shape[1]), use_buffered),     # packed vectors
                _resident_spec((f1p, f2p), use_buffered),            # w2 (resident)
                _resident_spec((f2p, outp), use_buffered),           # w3 (resident)
            ],
            out_specs=pl.BlockSpec((nb, b, outp), lambda i: (i, 0, 0)),
        )
        return pl.pallas_call(
            kernel,
            out_shape=jax.ShapeDtypeStruct((n_pad, b, outp), jnp.bfloat16),
            grid_spec=grid_spec,
            compiler_params=pltpu.CompilerParams(
                dimension_semantics=("parallel",)),
            cost_estimate=cost,
        )(states_p, w1, vec, w2, w3)

    if _BUFFERED_RESIDENT_OK[0]:
        try:
            out = run(True)
        except Exception:
            _BUFFERED_RESIDENT_OK[0] = False
            out = run(False)
    else:
        out = run(False)

    return out[:n, :, :kp["action_size"]].astype(jnp.float32)


def actor_forward(state, kp):
    """state: (B, state_size) f32 -> (B, action_size) f32."""
    return actor_forward_stacked(state[None], kp)[0]


def init_params(key, state_size, action_size, fc1_units=400, fc2_units=300):
    """Returns (raw_f32_params, packed_kernel_params).

    raw: nn.Linear-default-style init (uniform +/- 1/sqrt(fan_in)), f32,
    weights stored as (in_features, out_features).
    packed: zero-padded to lane multiples, bf16 weights, and one concatenated
    f32 vector operand [b1 | gamma | beta | b2 | b3] (padded gamma/beta/bias
    entries are 0 so padded columns stay exactly 0 through the whole net).
    """
    def linear(k, fan_in, fan_out):
        kw, kb = jax.random.split(k)
        bound = 1.0 / jnp.sqrt(jnp.float32(fan_in))
        w = jax.random.uniform(kw, (fan_in, fan_out), jnp.float32, -bound, bound)
        b = jax.random.uniform(kb, (1, fan_out), jnp.float32, -bound, bound)
        return w, b

    k1, k2, k3 = jax.random.split(key, 3)
    w1, b1 = linear(k1, state_size, fc1_units)
    w2, b2 = linear(k2, fc1_units, fc2_units)
    w3, b3 = linear(k3, fc2_units, action_size)
    raw = {
        "w1": w1, "b1": b1,
        "gamma": jnp.ones((1, fc1_units), jnp.float32),
        "beta": jnp.zeros((1, fc1_units), jnp.float32),
        "w2": w2, "b2": b2,
        "w3": w3, "b3": b3,
    }

    f1p = _round_up(fc1_units, LANE)
    f2p = _round_up(fc2_units, LANE)
    outp = _round_up(action_size, LANE)

    def pad_cols(a, cols):
        return jnp.pad(a, ((0, 0), (0, cols - a.shape[1])))

    def pad2(a, rows, cols):
        return jnp.pad(a, ((0, rows - a.shape[0]), (0, cols - a.shape[1])))

    vec = jnp.concatenate([
        pad_cols(b1, f1p),
        pad_cols(raw["gamma"], f1p),   # padded gamma columns are 0, not 1
        pad_cols(raw["beta"], f1p),
        pad_cols(b2, f2p),
        pad_cols(b3, outp),
    ], axis=1).astype(jnp.float32)

    packed = {
        "w1": pad2(w1, state_size, f1p).astype(jnp.bfloat16),
        "w2": pad2(w2, f1p, f2p).astype(jnp.bfloat16),
        "w3": pad2(w3, f2p, outp).astype(jnp.bfloat16),
        "vec": vec,
        "action_size": action_size,
    }
    return raw, packed


def actor_reference_bf16(state, kp):
    """Pure-JAX reference mirroring the kernel numerics (bf16 matmul inputs,
    f32 accumulate / elementwise, bf16-rounded output), using padded params."""
    f1p, f2p = kp["w1"].shape[1], kp["w2"].shape[1]
    vec = kp["vec"]
    b1 = vec[:, :f1p]
    gamma = vec[:, f1p:2 * f1p]
    beta = vec[:, 2 * f1p:3 * f1p]
    b2 = vec[:, 3 * f1p:3 * f1p + f2p]
    b3 = vec[:, 3 * f1p + f2p:]

    def bdot(a, w):
        return jnp.dot(a.astype(jnp.bfloat16).astype(jnp.float32),
                       w.astype(jnp.float32),
                       preferred_element_type=jnp.float32)

    h1 = bdot(state, kp["w1"]) + b1
    mu = jnp.mean(h1, axis=0, keepdims=True)
    d = h1 - mu
    var = jnp.mean(d * d, axis=0, keepdims=True)
    a1 = jnp.maximum(d * jax.lax.rsqrt(var + EPS) * gamma + beta, 0.0)
    a2 = jnp.maximum(bdot(a1, kp["w2"]) + b2, 0.0)
    y = jnp.tanh(bdot(a2, kp["w3"]) + b3)
    # Kernel emits bf16 and the wrapper upcasts, so match that rounding.
    return y.astype(jnp.bfloat16).astype(jnp.float32)[:, :kp["action_size"]]


def actor_reference_f32(state, p):
    """Full-precision reference of the PyTorch forward (training-mode BN)."""
    h1 = state @ p["w1"] + p["b1"]
    mu = jnp.mean(h1, axis=0, keepdims=True)
    var = jnp.mean((h1 - mu) ** 2, axis=0, keepdims=True)
    a1 = jnp.maximum((h1 - mu) / jnp.sqrt(var + EPS) * p["gamma"] + p["beta"], 0.0)
    a2 = jnp.maximum(a1 @ p["w2"] + p["b2"], 0.0)
    return jnp.tanh(a2 @ p["w3"] + p["b3"])


# TODO(synk): eval-mode BatchNorm (running mean/var) is not implemented; the
# kernel always uses per-batch statistics like the PyTorch module in train().

if __name__ == "__main__":
    batch = 8
    state_size = 32
    action_size = 4

    key = jax.random.PRNGKey(0)
    k_params, k_state, k_stack, k_big = jax.random.split(key, 4)
    raw, kparams = init_params(k_params, state_size, action_size)

    # Single (B, state_size) batch, same as the PyTorch module's forward.
    state = jax.random.normal(k_state, (batch, state_size), jnp.float32)
    out = jax.block_until_ready(actor_forward(state, kparams))
    assert out.shape == (batch, action_size)

    ref = actor_reference_bf16(state, kparams)
    err = float(jnp.max(jnp.abs(out - ref)))
    assert err < 2e-2, f"mismatch vs bf16-matched reference: {err}"

    # Loose sanity check vs the original full-f32 semantics (differences are
    # bf16 quantization of matmul inputs and of the stored output).
    ref32 = actor_reference_f32(state, raw)
    err32 = float(jnp.max(jnp.abs(out - ref32)))
    assert err32 < 1.5e-1, f"mismatch vs f32 reference: {err32}"

    # Stacked path: independent batches, 2 grid steps of NB=2 sub-batches each
    # (per-sub-batch BN statistics).
    states = jax.random.normal(k_stack, (4, batch, state_size), jnp.float32)
    outs = jax.block_until_ready(actor_forward_stacked(states, kparams))
    assert outs.shape == (4, batch, action_size)
    refs = jnp.stack([actor_reference_bf16(states[i], kparams) for i in range(4)])
    err = float(jnp.max(jnp.abs(outs - refs)))
    assert err < 2e-2, f"stacked mismatch: {err}"

    # Larger stack: exercises the NB blocking (M ~= 128/256 rows per matmul)
    # plus the N-padding path (steps * NB >= N).
    big = jax.random.normal(k_big, (40, batch, state_size), jnp.float32)
    outs_big = jax.block_until_ready(actor_forward_stacked(big, kparams))
    assert outs_big.shape == (40, batch, action_size)
    refs_big = jnp.stack([actor_reference_bf16(big[i], kparams) for i in range(40)])
    err = float(jnp.max(jnp.abs(outs_big - refs_big)))
    assert err < 2e-2, f"blocked-stack mismatch: {err}"

    print("KERNEL_OK")
</pallas_src>

<mosaic_0001>
module attributes {stable_mosaic.version = 11 : i64} {
  func.func @actor_kernel(%arg0: i32, %arg1: memref<1x8x32xf32, #tpu.memory_space<vmem>>, %arg2: memref<32x512xbf16, #tpu.memory_space<vmem>>, %arg3: memref<1x2048xf32, #tpu.memory_space<vmem>>, %arg4: memref<512x384xbf16, #tpu.memory_space<vmem>>, %arg5: memref<384x128xbf16, #tpu.memory_space<vmem>>, %arg6: memref<1x8x128xbf16, #tpu.memory_space<vmem>>) attributes {dimension_semantics = [#tpu.dimension_semantics<parallel>], iteration_bounds = array<i64: 1>, scalar_prefetch = 0 : i64, scratch_operands = 0 : i64, tpu.core_type = #tpu.core_type<tc>, window_params = [{transform_indices = @transform_0, window_bounds = array<i64: 1, 8, 32>}, {pipeline_mode = #tpu.pipeline_mode<synchronous>, transform_indices = @transform_1, window_bounds = array<i64: 32, 512>}, {pipeline_mode = #tpu.pipeline_mode<synchronous>, transform_indices = @transform_2, window_bounds = array<i64: 1, 2048>}, {pipeline_mode = #tpu.pipeline_mode<synchronous>, transform_indices = @transform_3, window_bounds = array<i64: 512, 384>}, {pipeline_mode = #tpu.pipeline_mode<synchronous>, transform_indices = @transform_4, window_bounds = array<i64: 384, 128>}, {transform_indices = @transform_5, window_bounds = array<i64: 1, 8, 128>}]} {
    %c0 = arith.constant 0 : index
    %c0_0 = arith.constant 0 : index
    %0 = vector.load %arg3[%c0, %c0_0] : memref<1x2048xf32, #tpu.memory_space<vmem>>, vector<1x512xf32>
    %c0_1 = arith.constant 0 : index
    %c512 = arith.constant 512 : index
    %1 = vector.load %arg3[%c0_1, %c512] : memref<1x2048xf32, #tpu.memory_space<vmem>>, vector<1x512xf32>
    %c0_2 = arith.constant 0 : index
    %c1024 = arith.constant 1024 : index
    %2 = vector.load %arg3[%c0_2, %c1024] : memref<1x2048xf32, #tpu.memory_space<vmem>>, vector<1x512xf32>
    %c0_3 = arith.constant 0 : index
    %c1536 = arith.constant 1536 : index
    %3 = vector.load %arg3[%c0_3, %c1536] : memref<1x2048xf32, #tpu.memory_space<vmem>>, vector<1x384xf32>
    %c0_4 = arith.constant 0 : index
    %c1920 = arith.constant 1920 : index
    %4 = vector.load %arg3[%c0_4, %c1920] : memref<1x2048xf32, #tpu.memory_space<vmem>>, vector<1x128xf32>
    %c0_5 = arith.constant 0 : index
    %c0_6 = arith.constant 0 : index
    %c0_7 = arith.constant 0 : index
    %5 = vector.load %arg1[%c0_5, %c0_6, %c0_7] : memref<1x8x32xf32, #tpu.memory_space<vmem>>, vector<1x8x32xf32>
    %6 = vector.shape_cast %5 : vector<1x8x32xf32> to vector<8x32xf32>
    %7 = arith.truncf %6 : vector<8x32xf32> to vector<8x32xbf16>
    %c0_8 = arith.constant 0 : index
    %c0_9 = arith.constant 0 : index
    %8 = vector.load %arg2[%c0_8, %c0_9] : memref<32x512xbf16, #tpu.memory_space<vmem>>, vector<32x512xbf16>
    %cst = arith.constant dense<0.000000e+00> : vector<8x512xf32>
    %9 = tpu.matmul %7, %8, %cst {dimension_numbers = #tpu.dot_dimension_numbers<[1], [0], [0], [1], [0, 0, 1, 1], [], []>} : vector<8x32xbf16>, vector<32x512xbf16>, vector<8x512xf32> -> vector<8x512xf32>
    %10 = vector.broadcast %0 : vector<1x512xf32> to vector<8x512xf32>
    %11 = arith.addf %9, %10 : vector<8x512xf32>
    %12 = vector.shape_cast %11 : vector<8x512xf32> to vector<1x8x512xf32>
    %cst_10 = arith.constant dense<0.000000e+00> : vector<1x512xf32>
    %13 = vector.multi_reduction <add>, %12, %cst_10 [1] : vector<1x8x512xf32> to vector<1x512xf32>
    %14 = vector.shape_cast %13 : vector<1x512xf32> to vector<1x1x512xf32>
    %cst_11 = arith.constant 8.000000e+00 : f32
    %15 = vector.broadcast %cst_11 : f32 to vector<1x1x512xf32>
    %16 = arith.divf %14, %15 : vector<1x1x512xf32>
    %17 = vector.broadcast %16 : vector<1x1x512xf32> to vector<1x8x512xf32>
    %18 = arith.subf %12, %17 : vector<1x8x512xf32>
    %19 = arith.mulf %18, %18 : vector<1x8x512xf32>
    %cst_12 = arith.constant dense<0.000000e+00> : vector<1x512xf32>
    %20 = vector.multi_reduction <add>, %19, %cst_12 [1] : vector<1x8x512xf32> to vector<1x512xf32>
    %21 = vector.shape_cast %20 : vector<1x512xf32> to vector<1x1x512xf32>
    %cst_13 = arith.constant 8.000000e+00 : f32
    %22 = vector.broadcast %cst_13 : f32 to vector<1x1x512xf32>
    %23 = arith.divf %21, %22 : vector<1x1x512xf32>
    %cst_14 = arith.constant 9.99999974E-6 : f32
    %24 = vector.broadcast %cst_14 : f32 to vector<1x1x512xf32>
    %25 = arith.addf %23, %24 : vector<1x1x512xf32>
    %26 = math.rsqrt %25 : vector<1x1x512xf32>
    %27 = vector.broadcast %26 : vector<1x1x512xf32> to vector<1x8x512xf32>
    %28 = arith.mulf %18, %27 : vector<1x8x512xf32>
    %29 = vector.shape_cast %1 : vector<1x512xf32> to vector<1x1x512xf32>
    %30 = vector.broadcast %29 : vector<1x1x512xf32> to vector<1x8x512xf32>
    %31 = arith.mulf %28, %30 : vector<1x8x512xf32>
    %32 = vector.shape_cast %2 : vector<1x512xf32> to vector<1x1x512xf32>
    %33 = vector.broadcast %32 : vector<1x1x512xf32> to vector<1x8x512xf32>
    %34 = arith.addf %31, %33 : vector<1x8x512xf32>
    %cst_15 = arith.constant 0.000000e+00 : f32
    %35 = vector.broadcast %cst_15 : f32 to vector<1x8x512xf32>
    %36 = arith.maximumf %34, %35 : vector<1x8x512xf32>
    %37 = vector.shape_cast %36 : vector<1x8x512xf32> to vector<8x512xf32>
    %38 = arith.truncf %37 : vector<8x512xf32> to vector<8x512xbf16>
    %c0_16 = arith.constant 0 : index
    %c0_17 = arith.constant 0 : index
    %39 = vector.load %arg4[%c0_16, %c0_17] : memref<512x384xbf16, #tpu.memory_space<vmem>>, vector<512x384xbf16>
    %cst_18 = arith.constant dense<0.000000e+00> : vector<8x384xf32>
    %40 = tpu.matmul %38, %39, %cst_18 {dimension_numbers = #tpu.dot_dimension_numbers<[1], [0], [0], [1], [0, 0, 1, 1], [], []>} : vector<8x512xbf16>, vector<512x384xbf16>, vector<8x384xf32> -> vector<8x384xf32>
    %41 = vector.broadcast %3 : vector<1x384xf32> to vector<8x384xf32>
    %42 = arith.addf %40, %41 : vector<8x384xf32>
    %cst_19 = arith.constant 0.000000e+00 : f32
    %43 = vector.broadcast %cst_19 : f32 to vector<8x384xf32>
    %44 = arith.maximumf %42, %43 : vector<8x384xf32>
    %45 = arith.truncf %44 : vector<8x384xf32> to vector<8x384xbf16>
    %c0_20 = arith.constant 0 : index
    %c0_21 = arith.constant 0 : index
    %46 = vector.load %arg5[%c0_20, %c0_21] : memref<384x128xbf16, #tpu.memory_space<vmem>>, vector<384x128xbf16>
    %cst_22 = arith.constant dense<0.000000e+00> : vector<8x128xf32>
    %47 = tpu.matmul %45, %46, %cst_22 {dimension_numbers = #tpu.dot_dimension_numbers<[1], [0], [0], [1], [0, 0, 1, 1], [], []>} : vector<8x384xbf16>, vector<384x128xbf16>, vector<8x128xf32> -> vector<8x128xf32>
    %48 = vector.broadcast %4 : vector<1x128xf32> to vector<8x128xf32>
    %49 = arith.addf %47, %48 : vector<8x128xf32>
    %50 = math.tanh %49 : vector<8x128xf32>
    %51 = vector.shape_cast %50 : vector<8x128xf32> to vector<1x8x128xf32>
    %52 = arith.truncf %51 : vector<1x8x128xf32> to vector<1x8x128xbf16>
    %c0_23 = arith.constant 0 : index
    %c0_24 = arith.constant 0 : index
    %c0_25 = arith.constant 0 : index
    %53 = vector.load %arg6[%c0_23, %c0_24, %c0_25] : memref<1x8x128xbf16, #tpu.memory_space<vmem>>, vector<1x8x128xbf16>
    tpu.vector_store %arg6[%c0_23, %c0_24, %c0_25], %52 {strides = array<i32>} : memref<1x8x128xbf16, #tpu.memory_space<vmem>>, vector<1x8x128xbf16>,
    return
  }
  func.func @transform_0(%arg0: i32) -> (i32, i32, i32) {
    %c0_i32 = arith.constant 0 : i32
    %c0_i32_0 = arith.constant 0 : i32
    %c0_i32_1 = arith.constant 0 : i32
    return %arg0, %c0_i32, %c0_i32_0 : i32, i32, i32
  }
  func.func @transform_1(%arg0: i32) -> (i32, i32) {
    %c0_i32 = arith.constant 0 : i32
    %c0_i32_0 = arith.constant 0 : i32
    %c0_i32_1 = arith.constant 0 : i32
    return %c0_i32, %c0_i32_0 : i32, i32
  }
  func.func @transform_2(%arg0: i32) -> (i32, i32) {
    %c0_i32 = arith.constant 0 : i32
    %c0_i32_0 = arith.constant 0 : i32
    %c0_i32_1 = arith.constant 0 : i32
    return %c0_i32, %c0_i32_0 : i32, i32
  }
  func.func @transform_3(%arg0: i32) -> (i32, i32) {
    %c0_i32 = arith.constant 0 : i32
    %c0_i32_0 = arith.constant 0 : i32
    %c0_i32_1 = arith.constant 0 : i32
    return %c0_i32, %c0_i32_0 : i32, i32
  }
  func.func @transform_4(%arg0: i32) -> (i32, i32) {
    %c0_i32 = arith.constant 0 : i32
    %c0_i32_0 = arith.constant 0 : i32
    %c0_i32_1 = arith.constant 0 : i32
    return %c0_i32, %c0_i32_0 : i32, i32
  }
  func.func @transform_5(%arg0: i32) -> (i32, i32, i32) {
    %c0_i32 = arith.constant 0 : i32
    %c0_i32_0 = arith.constant 0 : i32
    %c0_i32_1 = arith.constant 0 : i32
    return %arg0, %c0_i32, %c0_i32_0 : i32, i32, i32
  }
}

module attributes {stable_mosaic.version = 11 : i64} {
  func.func @actor_kernel(%arg0: i32, %arg1: memref<1x8x32xf32, #tpu.memory_space<vmem>>, %arg2: memref<32x512xbf16, #tpu.memory_space<vmem>>, %arg3: memref<1x2048xf32, #tpu.memory_space<vmem>>, %arg4: memref<512x384xbf16, #tpu.memory_space<vmem>>, %arg5: memref<384x128xbf16, #tpu.memory_space<vmem>>, %arg6: memref<1x8x128xbf16, #tpu.memory_space<vmem>>) attributes {dimension_semantics = [#tpu.dimension_semantics<parallel>], iteration_bounds = array<i64: 1>, scalar_prefetch = 0 : i64, scratch_operands = 0 : i64, tpu.core_type = #tpu.core_type<tc>, window_params = [{transform_indices = @transform_0, window_bounds = array<i64: 1, 8, 32>}, {pipeline_mode = #tpu.pipeline_mode<synchronous>, transform_indices = @transform_1, window_bounds = array<i64: 32, 512>}, {pipeline_mode = #tpu.pipeline_mode<synchronous>, transform_indices = @transform_2, window_bounds = array<i64: 1, 2048>}, {pipeline_mode = #tpu.pipeline_mode<synchronous>, transform_indices = @transform_3, window_bounds = array<i64: 512, 384>}, {pipeline_mode = #tpu.pipeline_mode<synchronous>, transform_indices = @transform_4, window_bounds = array<i64: 384, 128>}, {transform_indices = @transform_5, window_bounds = array<i64: 1, 8, 128>}]} {
    %c0 = arith.constant 0 : index
    %c0_0 = arith.constant 0 : index
    %0 = vector.load %arg3[%c0, %c0_0] : memref<1x2048xf32, #tpu.memory_space<vmem>>, vector<1x512xf32>
    %c0_1 = arith.constant 0 : index
    %c512 = arith.constant 512 : index
    %1 = vector.load %arg3[%c0_1, %c512] : memref<1x2048xf32, #tpu.memory_space<vmem>>, vector<1x512xf32>
    %c0_2 = arith.constant 0 : index
    %c1024 = arith.constant 1024 : index
    %2 = vector.load %arg3[%c0_2, %c1024] : memref<1x2048xf32, #tpu.memory_space<vmem>>, vector<1x512xf32>
    %c0_3 = arith.constant 0 : index
    %c1536 = arith.constant 1536 : index
    %3 = vector.load %arg3[%c0_3, %c1536] : memref<1x2048xf32, #tpu.memory_space<vmem>>, vector<1x384xf32>
    %c0_4 = arith.constant 0 : index
    %c1920 = arith.constant 1920 : index
    %4 = vector.load %arg3[%c0_4, %c1920] : memref<1x2048xf32, #tpu.memory_space<vmem>>, vector<1x128xf32>
    %c0_5 = arith.constant 0 : index
    %c0_6 = arith.constant 0 : index
    %c0_7 = arith.constant 0 : index
    %5 = vector.load %arg1[%c0_5, %c0_6, %c0_7] : memref<1x8x32xf32, #tpu.memory_space<vmem>>, vector<1x8x32xf32>
    %6 = vector.shape_cast %5 : vector<1x8x32xf32> to vector<8x32xf32>
    %7 = arith.truncf %6 : vector<8x32xf32> to vector<8x32xbf16>
    %c0_8 = arith.constant 0 : index
    %c0_9 = arith.constant 0 : index
    %8 = vector.load %arg2[%c0_8, %c0_9] : memref<32x512xbf16, #tpu.memory_space<vmem>>, vector<32x512xbf16>
    %cst = arith.constant dense<0.000000e+00> : vector<8x512xf32>
    %9 = tpu.matmul %7, %8, %cst {dimension_numbers = #tpu.dot_dimension_numbers<[1], [0], [0], [1], [0, 0, 1, 1], [], []>} : vector<8x32xbf16>, vector<32x512xbf16>, vector<8x512xf32> -> vector<8x512xf32>
    %10 = vector.broadcast %0 : vector<1x512xf32> to vector<8x512xf32>
    %11 = arith.addf %9, %10 : vector<8x512xf32>
    %12 = vector.shape_cast %11 : vector<8x512xf32> to vector<1x8x512xf32>
    %cst_10 = arith.constant dense<0.000000e+00> : vector<1x512xf32>
    %13 = vector.multi_reduction <add>, %12, %cst_10 [1] : vector<1x8x512xf32> to vector<1x512xf32>
    %14 = vector.shape_cast %13 : vector<1x512xf32> to vector<1x1x512xf32>
    %cst_11 = arith.constant 8.000000e+00 : f32
    %15 = vector.broadcast %cst_11 : f32 to vector<1x1x512xf32>
    %16 = arith.divf %14, %15 : vector<1x1x512xf32>
    %17 = vector.broadcast %16 : vector<1x1x512xf32> to vector<1x8x512xf32>
    %18 = arith.subf %12, %17 : vector<1x8x512xf32>
    %19 = arith.mulf %18, %18 : vector<1x8x512xf32>
    %cst_12 = arith.constant dense<0.000000e+00> : vector<1x512xf32>
    %20 = vector.multi_reduction <add>, %19, %cst_12 [1] : vector<1x8x512xf32> to vector<1x512xf32>
    %21 = vector.shape_cast %20 : vector<1x512xf32> to vector<1x1x512xf32>
    %cst_13 = arith.constant 8.000000e+00 : f32
    %22 = vector.broadcast %cst_13 : f32 to vector<1x1x512xf32>
    %23 = arith.divf %21, %22 : vector<1x1x512xf32>
    %cst_14 = arith.constant 9.99999974E-6 : f32
    %24 = vector.broadcast %cst_14 : f32 to vector<1x1x512xf32>
    %25 = arith.addf %23, %24 : vector<1x1x512xf32>
    %26 = math.rsqrt %25 : vector<1x1x512xf32>
    %27 = vector.broadcast %26 : vector<1x1x512xf32> to vector<1x8x512xf32>
    %28 = arith.mulf %18, %27 : vector<1x8x512xf32>
    %29 = vector.shape_cast %1 : vector<1x512xf32> to vector<1x1x512xf32>
    %30 = vector.broadcast %29 : vector<1x1x512xf32> to vector<1x8x512xf32>
    %31 = arith.mulf %28, %30 : vector<1x8x512xf32>
    %32 = vector.shape_cast %2 : vector<1x512xf32> to vector<1x1x512xf32>
    %33 = vector.broadcast %32 : vector<1x1x512xf32> to vector<1x8x512xf32>
    %34 = arith.addf %31, %33 : vector<1x8x512xf32>
    %cst_15 = arith.constant 0.000000e+00 : f32
    %35 = vector.broadcast %cst_15 : f32 to vector<1x8x512xf32>
    %36 = arith.maximumf %34, %35 : vector<1x8x512xf32>
    %37 = vector.shape_cast %36 : vector<1x8x512xf32> to vector<8x512xf32>
    %38 = arith.truncf %37 : vector<8x512xf32> to vector<8x512xbf16>
    %c0_16 = arith.constant 0 : index
    %c0_17 = arith.constant 0 : index
    %39 = vector.load %arg4[%c0_16, %c0_17] : memref<512x384xbf16, #tpu.memory_space<vmem>>, vector<512x384xbf16>
    %cst_18 = arith.constant dense<0.000000e+00> : vector<8x384xf32>
    %40 = tpu.matmul %38, %39, %cst_18 {dimension_numbers = #tpu.dot_dimension_numbers<[1], [0], [0], [1], [0, 0, 1, 1], [], []>} : vector<8x512xbf16>, vector<512x384xbf16>, vector<8x384xf32> -> vector<8x384xf32>
    %41 = vector.broadcast %3 : vector<1x384xf32> to vector<8x384xf32>
    %42 = arith.addf %40, %41 : vector<8x384xf32>
    %cst_19 = arith.constant 0.000000e+00 : f32
    %43 = vector.broadcast %cst_19 : f32 to vector<8x384xf32>
    %44 = arith.maximumf %42, %43 : vector<8x384xf32>
    %45 = arith.truncf %44 : vector<8x384xf32> to vector<8x384xbf16>
    %c0_20 = arith.constant 0 : index
    %c0_21 = arith.constant 0 : index
    %46 = vector.load %arg5[%c0_20, %c0_21] : memref<384x128xbf16, #tpu.memory_space<vmem>>, vector<384x128xbf16>
    %cst_22 = arith.constant dense<0.000000e+00> : vector<8x128xf32>
    %47 = tpu.matmul %45, %46, %cst_22 {dimension_numbers = #tpu.dot_dimension_numbers<[1], [0], [0], [1], [0, 0, 1, 1], [], []>} : vector<8x384xbf16>, vector<384x128xbf16>, vector<8x128xf32> -> vector<8x128xf32>
    %48 = vector.broadcast %4 : vector<1x128xf32> to vector<8x128xf32>
    %49 = arith.addf %47, %48 : vector<8x128xf32>
    %50 = math.tanh %49 : vector<8x128xf32>
    %51 = vector.shape_cast %50 : vector<8x128xf32> to vector<1x8x128xf32>
    %52 = arith.truncf %51 : vector<1x8x128xf32> to vector<1x8x128xbf16>
    %c0_23 = arith.constant 0 : index
    %c0_24 = arith.constant 0 : index
    %c0_25 = arith.constant 0 : index
    %53 = vector.load %arg6[%c0_23, %c0_24, %c0_25] : memref<1x8x128xbf16, #tpu.memory_space<vmem>>, vector<1x8x128xbf16>
    tpu.vector_store %arg6[%c0_23, %c0_24, %c0_25], %52 {strides = array<i32>} : memref<1x8x128xbf16, #tpu.memory_space<vmem>>, vector<1x8x128xbf16>,
    return
  }
  func.func @transform_0(%arg0: i32) -> (i32, i32, i32) {
    %c0_i32 = arith.constant 0 : i32
    %c0_i32_0 = arith.constant 0 : i32
    %c0_i32_1 = arith.constant 0 : i32
    return %arg0, %c0_i32, %c0_i32_0 : i32, i32, i32
  }
  func.func @transform_1(%arg0: i32) -> (i32, i32) {
    %c0_i32 = arith.constant 0 : i32
    %c0_i32_0 = arith.constant 0 : i32
    %c0_i32_1 = arith.constant 0 : i32
    return %c0_i32, %c0_i32_0 : i32, i32
  }
  func.func @transform_2(%arg0: i32) -> (i32, i32) {
    %c0_i32 = arith.constant 0 : i32
    %c0_i32_0 = arith.constant 0 : i32
    %c0_i32_1 = arith.constant 0 : i32
    return %c0_i32, %c0_i32_0 : i32, i32
  }
  func.func @transform_3(%arg0: i32) -> (i32, i32) {
    %c0_i32 = arith.constant 0 : i32
    %c0_i32_0 = arith.constant 0 : i32
    %c0_i32_1 = arith.constant 0 : i32
    return %c0_i32, %c0_i32_0 : i32, i32
  }
  func.func @transform_4(%arg0: i32) -> (i32, i32) {
    %c0_i32 = arith.constant 0 : i32
    %c0_i32_0 = arith.constant 0 : i32
    %c0_i32_1 = arith.constant 0 : i32
    return %c0_i32, %c0_i32_0 : i32, i32
  }
  func.func @transform_5(%arg0: i32) -> (i32, i32, i32) {
    %c0_i32 = arith.constant 0 : i32
    %c0_i32_0 = arith.constant 0 : i32
    %c0_i32_1 = arith.constant 0 : i32
    return %arg0, %c0_i32, %c0_i32_0 : i32, i32, i32
  }
}

</mosaic_0001>

<bundles_post_ra>
// kernel: tpu_custom_call.1
= control target key start
LH: loop header
LB: loop body
LE: loop exit
PB: predicated region body
PF: predicated region fallthrough
CT: control target
= control target key end

     0   :  { %10 = vsyncpa [#allocation3], 0  ;;  %s2429_s0 = inlined_call_operand.hbm [shape: f32[1,8,32], index: 0, kind: input, shape index: {}]   ;;  %s2430_s1 = inlined_call_operand.hbm [shape: bf16[32,512], index: 1, kind: input, shape index: {}]   ;;  %s2431_s2 = inlined_call_operand.hbm [shape: f32[1,2048], index: 2, kind: input, shape index: {}]   ;;  %s2432_s3 = inlined_call_operand.hbm [shape: bf16[512,384], index: 3, kind: input, shape index: {}]   ;;  %s2433_s4 = inlined_call_operand.hbm [shape: bf16[384,128], index: 4, kind: input, shape index: {}]   ;;  %s2434_s5 = inlined_call_operand.hbm [shape: bf16[1,8,128], index: 5, kind: output, shape index: {}]  }
   0x1   :  { %11 = vsyncpa [#allocation6], 0 }
   0x2   :  { %12 = vsyncpa [#allocation9], 0  ;;  %s29_s20 = sshll.u32 %s2430_s1, 4  ;;  %s30_s20 = int_to_ptr.hbm [resolvable:$true] %s29_s20 }
   0x3   :  { %13 = vsyncpa [#allocation4], 0  ;;  %s2256_s21 = smov [#allocation5]   ;;  %s53_s25 = sshll.u32 %s2432_s3, 4  ;;  %s54_s25 = int_to_ptr.hbm [resolvable:$true] %s53_s25 }
   0x4   :  { %s31_s22 = sshll.u32 %s2256_s21, 4  ;;  %s2257_s26 = smov 256   ;;  %s32_s22 = int_to_ptr.vmem [resolvable:$true] %s31_s22 }
   0x5   :  { %s2258_s27 = smov 16   ;;  %s2259_s28 = smov [#allocation8]  }
   0x6   :  { %37 = dma.hbm_to_vmem [thread:$0]  %s30_s20, 1024, %s32_s22, [#allocation6], %s2257_s26, %s2257_s26, %s2258_s27  }
   0x7   :  { %s55_s29 = sshll.u32 %s2259_s28, 4  ;;  %s2260_s30 = smov 192   ;;  %s56_s29 = int_to_ptr.vmem [resolvable:$true] %s55_s29 }
   0x8   :  { %s2261_s6 = smov 12   ;;  %s19_s8 = sshll.u32 %s2429_s0, 4  ;;  %s20_s8 = int_to_ptr.hbm [resolvable:$true] %s19_s8 }
   0x9   :  { %61 = dma.hbm_to_vmem [thread:$0]  %s54_s25, 12288, %s56_s29, [#allocation9], %s2260_s30, %s2260_s30, %s2261_s6  }
   0xa   :  { %s2262_s9 = smov [#allocation2]   ;;  %s43_s12 = sshll.u32 %s2431_s2, 4  ;;  %s44_s12 = int_to_ptr.hbm [resolvable:$true] %s43_s12 }
   0xb   :  { %s21_s10 = sshll.u32 %s2262_s9, 4  ;;  %s2263_s13 = smov [#allocation7]   ;;  %s22_s10 = int_to_ptr.vmem [resolvable:$true] %s21_s10 }
   0xc   :  { %24 = dma.hbm_to_vmem [thread:$0]  %s20_s8, 128, %s22_s10, [#allocation3]  }
   0xd   :  { %s45_s14 = sshll.u32 %s2263_s13, 4  ;;  %s66_s17 = sshll.u32 %s2433_s4, 4  ;;  %s46_s14 = int_to_ptr.vmem [resolvable:$true] %s45_s14  ;;  %s67_s17 = int_to_ptr.hbm [resolvable:$true] %s66_s17 }
   0xe   :  { %48 = dma.hbm_to_vmem [thread:$0]  %s44_s12, 256, %s46_s14, [#allocation6]  }
   0xf   :  { %s2264_s0 = smov [#allocation10]   ;;  %s2265_s19 = smov 64  }
  0x10   :  { %s68_s18 = sshll.u32 %s2264_s0, 4  ;;  %s2266_s20 = smov 4   ;;  %s69_s18 = int_to_ptr.vmem [resolvable:$true] %s68_s18 }
  0x11   :  { %74 = dma.hbm_to_vmem [thread:$0]  %s67_s17, 3072, %s69_s18, [#allocation9], %s2265_s19, %s2265_s19, %s2266_s20  }
  0x12   :  { %2248 = dma.done.wait [#allocation3], 128  }
  0x13   :  { %2249 = vsyncadd [#allocation3], 4294967168 }
  0x14   :  { %2250 = dma.done.wait [#allocation6], 1280  }
  0x15   :  { %2251 = vsyncadd [#allocation6], 4294966016 }
  0x16   :  { %2252 = dma.done.wait [#allocation9], 15360  }
  0x17   :  { %2253 = vsyncadd [#allocation9], 4294951936  ;;  %v1452_v0 = vld [vmem:[#allocation5 + $0x20] sm:$0xf]  ;;  %v1956_v1 = vld [vmem:[#allocation5 + $0x2c] sm:$0xf0] }
  0x18   :  { %v1954_v2 = vld [vmem:[#allocation5 + $0x24] sm:$0xf]  ;;  %v1453_v3 = vor.u32 %v1956_v1, %v1452_v0  ;;  %v1454_v4 = vld [vmem:[#allocation5 + $0x30] sm:$0xf0]  ;;  %v1460_v5 = vld [vmem:[#allocation5 + $0x28] sm:$0xf] }
  0x19   :  { %v1957_v6 = vld [vmem:[#allocation5 + $0x34] sm:$0xf0]  ;;  %v1457_v7 = vor.u32 %v1954_v2, %v1454_v4  ;;  %v1436_v9 = vld [vmem:[#allocation5] sm:$0xf]  ;;  %v1952_v10 = vld [vmem:[#allocation5 + $0xc] sm:$0xf0] }
  0x1a   :  { %v1461_v8 = vor.u32 %v1957_v6, %v1460_v5  ;;  %v1950_v11 = vld [vmem:[#allocation5 + $0x4] sm:$0xf]  ;;  %170 = vmatpush.bf16.msra.mxu3 %v1453_v3  ;;  %v1437_v12 = vor.u32 %v1952_v10, %v1436_v9  ;;  %v1438_v13 = vld [vmem:[#allocation5 + $0x10] sm:$0xf0]  ;;  %v1444_v14 = vld [vmem:[#allocation5 + $0x8] sm:$0xf] }
  0x1b   :  { %v1953_v15 = vld [vmem:[#allocation5 + $0x14] sm:$0xf0]  ;;  %183 = vmatpush.bf16.msra.mxu1 %v1457_v7  ;;  %v1441_v16 = vor.u32 %v1950_v11, %v1438_v13  ;;  %v1955_v19 = vld [vmem:[#allocation5 + $0x2c] sm:$0xf]  ;;  %v1462_v20 = vld [vmem:[#allocation5 + $0x38] sm:$0xf0] }
  0x1c   :  { %196 = vmatpush.bf16.msra.mxu2 %v1461_v8  ;;  %v1445_v17 = vor.u32 %v1953_v15, %v1444_v14  ;;  %v101_v18 = vld [vmem:[#allocation2] sm:$0xff]  ;;  %v1465_v21 = vor.u32 %v1955_v19, %v1462_v20  ;;  %v1951_v23 = vld [vmem:[#allocation5 + $0xc] sm:$0xf]  ;;  %vm160_vm0 = vcmask 261120   ;;  %v2004_v27 = vld [vmem:[#allocation8 + $0x170] sm:$0xf0] }
  0x1d   :  { %v102_v22 = vpack.c.bf16 %v101_v18, %v101_v18  ;;  %v1446_v24 = vld [vmem:[#allocation5 + $0x18] sm:$0xf0]  ;;  %v1652_v26 = vld [vmem:[#allocation8 + $0x168] sm:$0xf]  ;;  %v1640_v29 = vld [vmem:[#allocation8 + $0x150] sm:$0xf] }
  0x1e   :  { %171 = vmatpush.bf16.msra.mxu3 %v1437_v12  ;;  %v1449_v25 = vor.u32 %v1951_v23, %v1446_v24  ;;  %v1653_v28 = vor.u32 %v2004_v27, %v1652_v26  ;;  %v2001_v30 = vld [vmem:[#allocation8 + $0x158] sm:$0xf0]  ;;  %v1556_v32 = vld [vmem:[#allocation8 + $0xa8] sm:$0xf]  ;;  %v1980_v33 = vld [vmem:[#allocation8 + $0xb0] sm:$0xf0] }
  0x1f   :  { %184 = vmatpush.bf16.msra.mxu1 %v1441_v16  ;;  %v1641_v31 = vor.u32 %v2001_v30, %v1640_v29  ;;  %v1748_v34 = vld [vmem:[#allocation8 + $0x228] sm:$0xf]  ;;  %v1557_v35 = vor.u32 %v1980_v33, %v1556_v32  ;;  %v2028_v36 = vld [vmem:[#allocation8 + $0x230] sm:$0xf0]  ;;  %v1628_v38 = vld [vmem:[#allocation8 + $0x138] sm:$0xf] }
  0x20   :  { %197 = vmatpush.bf16.msra.mxu2 %v1445_v17  ;;  %v1749_v37 = vor.u32 %v2028_v36, %v1748_v34  ;;  %v1998_v39 = vld [vmem:[#allocation8 + $0x140] sm:$0xf0]  ;;  %v1544_v41 = vld [vmem:[#allocation8 + $0x90] sm:$0xf]  ;;  %v1977_v42 = vld [vmem:[#allocation8 + $0x98] sm:$0xf0] }
  0x21   :  { %1466 = vmatmul.msk.bf16.vlgmr.msra.gmra.mxu3 %vm160_vm0, %v102_v22  ;;  %1016 = vmatpush.bf16.msra.mxu0 %v1557_v35  ;;  %v1629_v40 = vor.u32 %v1998_v39, %v1628_v38  ;;  %v1736_v43 = vld [vmem:[#allocation8 + $0x210] sm:$0xf]  ;;  %v1545_v44 = vor.u32 %v1977_v42, %v1544_v41  ;;  %v2025_v45 = vld [vmem:[#allocation8 + $0x218] sm:$0xf0]  ;;  %v2267_v46 = vmov 8.0   ;;  %s2268_s2 = smov [#allocation11]  }
  0x22   :  { %209 = vmatpush.bf16.msrb.mxu3 %v1465_v21  ;;  %1467 = vmatmul.msk.bf16.vlgmr.msra.gmra.mxu1 %vm160_vm0, %v102_v22  ;;  %2092 = vrcp.f32 %v2267_v46  ;;  %v1737_v47 = vor.u32 %v2025_v45, %v1736_v43  ;;  %v1616_v48 = vld [vmem:[#allocation8 + $0x120] sm:$0xf]  ;;  %v1995_v49 = vld [vmem:[#allocation8 + $0x128] sm:$0xf0]  ;;  %v1532_v51 = vld [vmem:[#allocation8 + $0x78] sm:$0xf] }
  0x23   :  { %1468 = vmatmul.msk.bf16.vlgmr.msra.gmra.mxu2 %vm160_vm0, %v102_v22  ;;  %1029 = vmatpush.bf16.msrb.mxu1 %v1653_v28  ;;  %v1617_v50 = vor.u32 %v1995_v49, %v1616_v48  ;;  %v1974_v52 = vld [vmem:[#allocation8 + $0x80] sm:$0xf0]  ;;  %v1724_v53 = vld [vmem:[#allocation8 + $0x1f8] sm:$0xf]  ;;  %v1604_v57 = vld [vmem:[#allocation8 + $0x108] sm:$0xf] }
  0x24   :  { %1042 = vmatpush.bf16.msrb.mxu2 %v1749_v37  ;;  %v1533_v54 = vor.u32 %v1974_v52, %v1532_v51  ;;  %v2022_v55 = vld [vmem:[#allocation8 + $0x200] sm:$0xf0]  ;;  %v1992_v58 = vld [vmem:[#allocation8 + $0x110] sm:$0xf0]  ;;  %v1520_v61 = vld [vmem:[#allocation8 + $0x60] sm:$0xf] }
  0x25   :  { %1017 = vmatpush.bf16.msra.mxu0 %v1545_v44  ;;  %v1725_v56 = vor.u32 %v2022_v55, %v1724_v53  ;;  %v1605_v59 = vor.u32 %v1992_v58, %v1604_v57  ;;  %v1971_v62 = vld [vmem:[#allocation8 + $0x68] sm:$0xf0]  ;;  %v1712_v63 = vld [vmem:[#allocation8 + $0x1e0] sm:$0xf]  ;;  %v1592_v3 = vld [vmem:[#allocation8 + $0xf0] sm:$0xf] }
  0x26   :  { %210 = vmatpush.bf16.msrb.mxu3 %v1449_v25  ;;  %v1521_v0 = vor.u32 %v1971_v62, %v1520_v61  ;;  %v2019_v1 = vld [vmem:[#allocation8 + $0x1e8] sm:$0xf0]  ;;  %v1989_v4 = vld [vmem:[#allocation8 + $0xf8] sm:$0xf0]  ;;  %v2316_v5 = vld [vmem:[#allocation7] sm:$0xf] }
  0x27   :  { %1030 = vmatpush.bf16.msrb.mxu1 %v1641_v31  ;;  %v1713_v2 = vor.u32 %v2019_v1, %v1712_v63  ;;  %v1593_v7 = vor.u32 %v1989_v4, %v1592_v3  ;;  %v1508_v8 = vld [vmem:[#allocation8 + $0x48] sm:$0xf]  ;;  %v1968_v9 = vld [vmem:[#allocation8 + $0x50] sm:$0xf0]  ;;  %v113_v15 = vperm.slane %v2316_v5, 1  ;;  %v112_v35 = vperm.slane %v2316_v5, 0 }
  0x28   :  { %1043 = vmatpush.bf16.msrb.mxu2 %v1737_v47  ;;  %v2314_v60 = vpop.eup %2092  ;;  %v1700_v10 = vld [vmem:[#allocation8 + $0x1c8] sm:$0xf]  ;;  %v1509_v11 = vor.u32 %v1968_v9, %v1508_v8  ;;  %v2016_v12 = vld [vmem:[#allocation8 + $0x1d0] sm:$0xf0]  ;;  %v1580_v18 = vld [vmem:[#allocation8 + $0xd8] sm:$0xf] }
  0x29   :  { %1018 = vmatpush.bf16.msra.mxu0 %v1533_v54  ;;  %v241_v6 = vmul.f32 8.0, %v2314_v60  ;;  %v1844_v13 = vld [vmem:[#allocation8 + $0x2e8] sm:$0xf]  ;;  %v2052_v14 = vld [vmem:[#allocation8 + $0x2f0] sm:$0xf0]  ;;  %v1701_v16 = vor.u32 %v2016_v12, %v1700_v10  ;;  %vm245_vm1 = vweird.f32 %v2314_v60  ;;  %s1420_s4 = sshll.u32 %s2268_s2, 4  ;;  %s1421_s4 = int_to_ptr.vmem [resolvable:$true] %s1420_s4 }
  0x2a   :  { %v1845_v17 = vor.u32 %v2052_v14, %v1844_v13  ;;  %v1986_v19 = vld [vmem:[#allocation8 + $0xe0] sm:$0xf0]  ;;  %v1965_v23 = vld [vmem:[#allocation8 + $0x38] sm:$0xf0]  ;;  %v1688_v24 = vld [vmem:[#allocation8 + $0x1b0] sm:$0xf] }
  0x2b   :  { %1031 = vmatpush.bf16.msrb.mxu1 %v1629_v40  ;;  %v242_v20 = vsub.f32 1.0, %v241_v6  ;;  %v1581_v21 = vor.u32 %v1986_v19, %v1580_v18  ;;  %v2013_v27 = vld [vmem:[#allocation8 + $0x1b8] sm:$0xf0]  ;;  %v1832_v28 = vld [vmem:[#allocation8 + $0x2d0] sm:$0xf]  ;;  %v114_v40 = vperm.slane %v2316_v5, 2 }
  0x2c   :  { %1044 = vmatpush.bf16.msrb.mxu2 %v1725_v56  ;;  %1055 = vmatpush.bf16.msra.mxu3 %v1845_v17  ;;  %v2049_v29 = vld [vmem:[#allocation8 + $0x2d8] sm:$0xf0]  ;;  %v1689_v31 = vor.u32 %v2013_v27, %v1688_v24  ;;  %v1568_v33 = vld [vmem:[#allocation8 + $0xc0] sm:$0xf]  ;;  %v1983_v34 = vld [vmem:[#allocation8 + $0xc8] sm:$0xf0] }
  0x2d   :  { %1019 = vmatpush.bf16.msra.mxu0 %v1521_v0  ;;  %v1833_v32 = vor.u32 %v2049_v29, %v1832_v28  ;;  %v1569_v36 = vor.u32 %v1983_v34, %v1568_v33  ;;  %v2003_v37 = vld [vmem:[#allocation8 + $0x16c] sm:$0xf]  ;;  %v1654_v38 = vld [vmem:[#allocation8 + $0x174] sm:$0xf0]  ;;  %v1962_v43 = vld [vmem:[#allocation8 + $0x20] sm:$0xf0]  ;;  %v243_v44 = vmul.f32 %v2314_v60, %v242_v20 }
  0x2e   :  { %v1657_v41 = vor.u32 %v2003_v37, %v1654_v38  ;;  %v1484_v42 = vld [vmem:[#allocation8 + $0x18] sm:$0xf]  ;;  %v2010_v47 = vld [vmem:[#allocation8 + $0x1a0] sm:$0xf0]  ;;  %v2000_v56 = vld [vmem:[#allocation8 + $0x154] sm:$0xf] }
  0x2f   :  { %1032 = vmatpush.bf16.msrb.mxu1 %v1617_v50  ;;  %v1485_v45 = vor.u32 %v1962_v43, %v1484_v42  ;;  %v1676_v46 = vld [vmem:[#allocation8 + $0x198] sm:$0xf]  ;;  %v2046_v52 = vld [vmem:[#allocation8 + $0x2c0] sm:$0xf0]  ;;  %v1642_v57 = vld [vmem:[#allocation8 + $0x15c] sm:$0xf0]  ;;  %v244_v0 = vadd.f32 %v2314_v60, %v243_v44 }
  0x30   :  { %1045 = vmatpush.bf16.msrb.mxu2 %v1713_v2  ;;  %1056 = vmatpush.bf16.msra.mxu3 %v1833_v32  ;;  %v1820_v48 = vld [vmem:[#allocation8 + $0x2b8] sm:$0xf]  ;;  %v1677_v51 = vor.u32 %v2010_v47, %v1676_v46  ;;  %v1645_v61 = vor.u32 %v2000_v56, %v1642_v57  ;;  %v1472_v62 = vld [vmem:[#allocation8] sm:$0xf]  ;;  %v1959_v63 = vld [vmem:[#allocation8 + $0x8] sm:$0xf0] }
  0x31   :  { %1469 = vmatmul.msk.bf16.vlgmr.msrb.gmra.mxu3 %vm160_vm0, %v102_v22  ;;  %1020 = vmatpush.bf16.msra.mxu0 %v1509_v11  ;;  %v1496_v22 = vld [vmem:[#allocation8 + $0x30] sm:$0xf]  ;;  %v1821_v55 = vor.u32 %v2046_v52, %v1820_v48  ;;  %v1473_v3 = vor.u32 %v1959_v63, %v1472_v62  ;;  %v1664_v4 = vld [vmem:[#allocation8 + $0x180] sm:$0xf]  ;;  %v2007_v6 = vld [vmem:[#allocation8 + $0x188] sm:$0xf0] }
  0x32   :  { %v1497_v26 = vor.u32 %v1965_v23, %v1496_v22  ;;  %v1665_v9 = vor.u32 %v2007_v6, %v1664_v4  ;;  %v1808_v10 = vld [vmem:[#allocation8 + $0x2a0] sm:$0xf]  ;;  %v2043_v11 = vld [vmem:[#allocation8 + $0x2a8] sm:$0xf0]  ;;  %v1750_v20 = vld [vmem:[#allocation8 + $0x234] sm:$0xf0]  ;;  %v2340_v22 = vsel %vm245_vm1, %v2314_v60, %v244_v0 }
  0x33   :  { %1033 = vmatpush.bf16.msrb.mxu1 %v1605_v59  ;;  %v1809_v13 = vor.u32 %v2043_v11, %v1808_v10  ;;  %v1979_v14 = vld [vmem:[#allocation8 + $0xac] sm:$0xf]  ;;  %v2040_v32 = vld [vmem:[#allocation8 + $0x290] sm:$0xf0]  ;;  %v1546_v37 = vld [vmem:[#allocation8 + $0x9c] sm:$0xf0] }
  0x34   :  { %1046 = vmatpush.bf16.msrb.mxu2 %v1701_v16  ;;  %1057 = vmatpush.bf16.msra.mxu3 %v1821_v55  ;;  %v2027_v16 = vld [vmem:[#allocation8 + $0x22c] sm:$0xf]  ;;  %v1976_v33 = vld [vmem:[#allocation8 + $0x94] sm:$0xf]  ;;  %v1738_v60 = vld [vmem:[#allocation8 + $0x21c] sm:$0xf0] }
  0x35   :  { %1021 = vmatpush.bf16.msra.mxu0 %v1497_v26  ;;  %v1753_v24 = vor.u32 %v2027_v16, %v1750_v20  ;;  %v1796_v26 = vld [vmem:[#allocation8 + $0x288] sm:$0xf]  ;;  %v2024_v38 = vld [vmem:[#allocation8 + $0x214] sm:$0xf]  ;;  %v1994_v43 = vld [vmem:[#allocation8 + $0x124] sm:$0xf] }
  0x36   :  { %v1741_v42 = vor.u32 %v2024_v38, %v1738_v60  ;;  %v1618_v44 = vld [vmem:[#allocation8 + $0x12c] sm:$0xf0]  ;;  %v2037_v48 = vld [vmem:[#allocation8 + $0x278] sm:$0xf0]  ;;  %v115_v52 = vperm.slane %v2316_v5, 3  ;;  %s1422_s23 = sshll.u32 %s2434_s5, 4  ;;  %s1423_s23 = int_to_ptr.hbm [resolvable:$true] %s1422_s23 }
  0x37   :  { %1034 = vmatpush.bf16.msrb.mxu1 %v1593_v7  ;;  %v1621_v47 = vor.u32 %v1994_v43, %v1618_v44  ;;  %v1534_v55 = vld [vmem:[#allocation8 + $0x84] sm:$0xf0]  ;;  %v2021_v56 = vld [vmem:[#allocation8 + $0x1fc] sm:$0xf]  ;;  %v1991_v62 = vld [vmem:[#allocation8 + $0x10c] sm:$0xf] }
  0x38   :  { %1047 = vmatpush.bf16.msrb.mxu2 %v1689_v31  ;;  %1058 = vmatpush.bf16.msra.mxu3 %v1809_v13  ;;  %v1606_v63 = vld [vmem:[#allocation8 + $0x114] sm:$0xf0]  ;;  %v2034_v4 = vld [vmem:[#allocation8 + $0x260] sm:$0xf0]  ;;  %v2051_v38 = vld [vmem:[#allocation8 + $0x2ec] sm:$0xf] }
  0x39   :  { %1022 = vmatpush.bf16.msra.mxu0 %v1485_v45  ;;  %v1784_v45 = vld [vmem:[#allocation8 + $0x270] sm:$0xf]  ;;  %v1846_v60 = vld [vmem:[#allocation8 + $0x2f4] sm:$0xf0]  ;;  %v1582_v43 = vld [vmem:[#allocation8 + $0xe4] sm:$0xf0] }
  0x3b   :  { %1035 = vmatpush.bf16.msrb.mxu1 %v1581_v21  ;;  %v1997_v21 = vld [vmem:[#allocation8 + $0x13c] sm:$0xf] }
  0x3c   :  { %1048 = vmatpush.bf16.msrb.mxu2 %v1677_v51 }
  0x3d   :  { %1023 = vmatpush.bf16.msra.mxu0 %v1473_v3  ;;  %v1772_v3 = vld [vmem:[#allocation8 + $0x258] sm:$0xf] }
  0x3e   :  { %v1773_v6 = vor.u32 %v2034_v4, %v1772_v3 }
  0x3f   :  { %1036 = vmatpush.bf16.msrb.mxu1 %v1569_v36  ;;  %v1797_v36 = vor.u32 %v2040_v32, %v1796_v26 }
  0x40   :  { %1049 = vmatpush.bf16.msrb.mxu2 %v1665_v9  ;;  %v2018_v9 = vld [vmem:[#allocation8 + $0x1e4] sm:$0xf] }
  0x41   :  { %1059 = vmatpush.bf16.msra.mxu3 %v1797_v36 }
  0x43   :  { %1081 = vmatpush.bf16.msra.mxu1 %v1657_v41  ;;  %v1549_v41 = vor.u32 %v1976_v33, %v1546_v37  ;;  %v2015_v33 = vld [vmem:[#allocation8 + $0x1cc] sm:$0xf] }
  0x44   :  { %1094 = vmatpush.bf16.msra.mxu2 %v1753_v24  ;;  %v1760_v24 = vld [vmem:[#allocation8 + $0x240] sm:$0xf] }
  0x47   :  { %1082 = vmatpush.bf16.msra.mxu1 %v1645_v61  ;;  %v1726_v61 = vld [vmem:[#allocation8 + $0x204] sm:$0xf0] }
  0x48   :  { %1095 = vmatpush.bf16.msra.mxu2 %v1741_v42  ;;  %v1985_v42 = vld [vmem:[#allocation8 + $0xdc] sm:$0xf] }
  0x9f   :  { %v186_v25 = vpop.f32.mrf.mxu1 }
  0xa0   :  { %v2320_v30 = vadd.f32 %v186_v25, %v113_v15  ;;  %v1558_v15 = vld [vmem:[#allocation8 + $0xb4] sm:$0xf0]  ;;  %v1630_v25 = vld [vmem:[#allocation8 + $0x144] sm:$0xf0] }
  0xa1   :  { %v1561_v19 = vor.u32 %v1979_v14, %v1558_v15  ;;  %v1633_v31 = vor.u32 %v1997_v21, %v1630_v25  ;;  %v1714_v14 = vld [vmem:[#allocation8 + $0x1ec] sm:$0xf0]  ;;  %v2031_v25 = vld [vmem:[#allocation8 + $0x248] sm:$0xf0] }
  0xa2   :  { %v222_v39 = vrot.slane %v2320_v30, 4 }
  0xa3   :  { %1068 = vmatpush.bf16.msrb.mxu0 %v1561_v19  ;;  %1083 = vmatpush.bf16.msra.mxu1 %v1633_v31  ;;  %v1594_v19 = vld [vmem:[#allocation8 + $0xfc] sm:$0xf0] }
  0xa4   :  { %v223_v49 = vadd.f32 %v222_v39, %v2320_v30  ;;  %v173_v50 = vpop.f32.mrf.mxu3 }
  0xa5   :  { %v2327_v53 = vadd.f32 %v173_v50, %v112_v35 }
  0xa6   :  { %v199_v54 = vpop.f32.mrf.mxu2  ;;  %v224_v58 = vrot.slane %v223_v49, 2 }
  0xa7   :  { %v2329_v59 = vadd.f32 %v199_v54, %v114_v40  ;;  %v216_v1 = vrot.slane %v2327_v53, 4  ;;  %v188_v2 = vpop.f32.mrf.mxu1  ;;  %1069 = vmatpush.bf16.msrb.mxu0 %v1549_v41  ;;  %v1785_v54 = vor.u32 %v2037_v48, %v1784_v45  ;;  %1084 = vmatpush.bf16.msra.mxu1 %v1621_v47  ;;  %v1849_v41 = vor.u32 %v2051_v38, %v1846_v60  ;;  %v1964_v47 = vld [vmem:[#allocation8 + $0x34] sm:$0xf]  ;;  %v1498_v48 = vld [vmem:[#allocation8 + $0x3c] sm:$0xf0] }
  0xa8   :  { %v225_v7 = vadd.f32 %v224_v58, %v223_v49  ;;  %v1973_v49 = vld [vmem:[#allocation8 + $0x7c] sm:$0xf]  ;;  %v1609_v2 = vor.u32 %v1991_v62, %v1606_v63  ;;  %v2048_v62 = vld [vmem:[#allocation8 + $0x2d4] sm:$0xf]  ;;  %v1834_v63 = vld [vmem:[#allocation8 + $0x2dc] sm:$0xf0] }
  0xa9   :  { %v228_v8 = vrot.slane %v2329_v59, 4  ;;  %v217_v12 = vadd.f32 %v216_v1, %v2327_v53  ;;  %v1537_v58 = vor.u32 %v1973_v49, %v1534_v55  ;;  %1060 = vmatpush.bf16.msra.mxu3 %v1785_v54  ;;  %v1501_v54 = vor.u32 %v1964_v47, %v1498_v48  ;;  %v2012_v55 = vld [vmem:[#allocation8 + $0x1b4] sm:$0xf]  ;;  %v1810_v38 = vld [vmem:[#allocation8 + $0x2ac] sm:$0xf0] }
  0xaa   :  { %v226_v17 = vrot.slane %v225_v7, 1  ;;  %v2036_v48 = vld [vmem:[#allocation8 + $0x274] sm:$0xf] }
  0xab   :  { %v229_v18 = vadd.f32 %v228_v8, %v2329_v59  ;;  %v218_v23 = vrot.slane %v217_v12, 2  ;;  %v1522_v8 = vld [vmem:[#allocation8 + $0x6c] sm:$0xf0]  ;;  %1070 = vmatpush.bf16.msrb.mxu0 %v1537_v58  ;;  %1085 = vmatpush.bf16.msra.mxu1 %v1609_v2  ;;  %v1982_v2 = vld [vmem:[#allocation8 + $0xc4] sm:$0xf] }
  0xac   :  { %v227_v27 = vadd.f32 %v226_v17, %v225_v7  ;;  %v175_v29 = vpop.f32.mrf.mxu3  ;;  %v1970_v7 = vld [vmem:[#allocation8 + $0x64] sm:$0xf]  ;;  %v1717_v17 = vor.u32 %v2018_v9, %v1714_v14  ;;  %v1961_v9 = vld [vmem:[#allocation8 + $0x1c] sm:$0xf] }
  0xad   :  { %v230_v28 = vrot.slane %v229_v18, 2  ;;  %v219_v34 = vadd.f32 %v218_v23, %v217_v12  ;;  %v1525_v13 = vor.u32 %v1970_v7, %v1522_v8  ;;  %1061 = vmatpush.bf16.msra.mxu3 %v1773_v6  ;;  %v1510_v29 = vld [vmem:[#allocation8 + $0x54] sm:$0xf0]  ;;  %v2009_v14 = vld [vmem:[#allocation8 + $0x19c] sm:$0xf] }
  0xae   :  { %v201_v35 = vpop.f32.mrf.mxu2  ;;  %v248_v39 = vmul.f32 %v2340_v22, %v227_v27  ;;  %v1761_v27 = vor.u32 %v2031_v25, %v1760_v24 }
  0xaf   :  { %v231_v40 = vadd.f32 %v230_v28, %v229_v18  ;;  %v220_v46 = vrot.slane %v219_v34, 1  ;;  %v1988_v18 = vld [vmem:[#allocation8 + $0xf4] sm:$0xf]  ;;  %v1967_v28 = vld [vmem:[#allocation8 + $0x4c] sm:$0xf]  ;;  %1071 = vmatpush.bf16.msrb.mxu0 %v1525_v13 }
  0xb0   :  { %v2344_v50 = vsub.f32 %v2320_v30, %v248_v39  ;;  %v1729_v30 = vor.u32 %v2021_v56, %v1726_v61  ;;  %v1597_v23 = vor.u32 %v1988_v18, %v1594_v19  ;;  %v1690_v56 = vld [vmem:[#allocation8 + $0x1bc] sm:$0xf0] }
  0xb1   :  { %v232_v51 = vrot.slane %v231_v40, 1  ;;  %v221_v57 = vadd.f32 %v220_v46, %v219_v34  ;;  %v1702_v34 = vld [vmem:[#allocation8 + $0x1d4] sm:$0xf0]  ;;  %1062 = vmatpush.bf16.msra.mxu3 %v1761_v27  ;;  %v1585_v46 = vor.u32 %v1985_v42, %v1582_v43  ;;  %v1693_v61 = vor.u32 %v2012_v55, %v1690_v56  ;;  %v2039_v42 = vld [vmem:[#allocation8 + $0x28c] sm:$0xf] }
  0xb2   :  { %v256_v0 = vmul.f32 %v2344_v50, %v2344_v50  ;;  %1096 = vmatpush.bf16.msra.mxu2 %v1729_v30  ;;  %v1705_v37 = vor.u32 %v2015_v33, %v1702_v34  ;;  %1086 = vmatpush.bf16.msra.mxu1 %v1597_v23  ;;  %v1837_v30 = vor.u32 %v2048_v62, %v1834_v63  ;;  %v2045_v23 = vld [vmem:[#allocation8 + $0x2bc] sm:$0xf]  ;;  %v1666_v33 = vld [vmem:[#allocation8 + $0x18c] sm:$0xf0]  ;;  %v2042_v34 = vld [vmem:[#allocation8 + $0x2a4] sm:$0xf] }
  0xb3   :  { %v233_v1 = vadd.f32 %v232_v51, %v231_v40  ;;  %v247_v5 = vmul.f32 %v2340_v22, %v221_v57  ;;  %v1798_v43 = vld [vmem:[#allocation8 + $0x294] sm:$0xf0]  ;;  %v2033_v62 = vld [vmem:[#allocation8 + $0x25c] sm:$0xf]  ;;  %v1774_v63 = vld [vmem:[#allocation8 + $0x264] sm:$0xf0] }
  0xb4   :  { %v265_v10 = vrot.slane %v256_v0, 4  ;;  %v212_v12 = vpop.f32.mrf.mxu3 }
  0xb5   :  { %v249_v11 = vmul.f32 %v2340_v22, %v233_v1  ;;  %v2352_v15 = vsub.f32 %v2327_v53, %v247_v5  ;;  %v2354_v16 = vadd.f32 %v212_v12, %v115_v52  ;;  %1107 = vmatpush.bf16.msrb.mxu3 %v1849_v41  ;;  %v1570_v5 = vld [vmem:[#allocation8 + $0xcc] sm:$0xf0] }
  0xb6   :  { %v266_v20 = vadd.f32 %v265_v10, %v256_v0  ;;  %1097 = vmatpush.bf16.msra.mxu2 %v1717_v17  ;;  %1087 = vmatpush.bf16.msra.mxu1 %v1585_v46  ;;  %v1573_v8 = vor.u32 %v1982_v2, %v1570_v5  ;;  %v1486_v10 = vld [vmem:[#allocation8 + $0x24] sm:$0xf0]  ;;  %v1777_v5 = vor.u32 %v2033_v62, %v1774_v63  ;;  %v1552_v62 = vld [vmem:[#allocation8 + $0x98] sm:$0xf]  ;;  %v1978_v63 = vld [vmem:[#allocation8 + $0xa0] sm:$0xf0] }
  0xb7   :  { %v2357_v21 = vsub.f32 %v2329_v59, %v249_v11  ;;  %v255_v26 = vmul.f32 %v2352_v15, %v2352_v15  ;;  %v234_v53 = vrot.slane %v2354_v16, 4  ;;  %v1513_v59 = vor.u32 %v1967_v28, %v1510_v29  ;;  %v1678_v17 = vld [vmem:[#allocation8 + $0x1a4] sm:$0xf0]  ;;  %v1958_v28 = vld [vmem:[#allocation8 + $0x4] sm:$0xf] }
  0xb8   :  { %v267_v31 = vrot.slane %v266_v20, 2  ;;  %v1489_v13 = vor.u32 %v1961_v9, %v1486_v10  ;;  %v1474_v29 = vld [vmem:[#allocation8 + $0xc] sm:$0xf0]  ;;  %v2030_v9 = vld [vmem:[#allocation8 + $0x244] sm:$0xf] }
  0xb9   :  { %v257_v32 = vmul.f32 %v2357_v21, %v2357_v21  ;;  %v259_v35 = vrot.slane %v255_v26, 4  ;;  %v235_v36 = vadd.f32 %v234_v53, %v2354_v16  ;;  %1072 = vmatpush.bf16.msrb.mxu0 %v1513_v59  ;;  %1108 = vmatpush.bf16.msrb.mxu3 %v1837_v30  ;;  %v2382_v30 = vld [vmem:[#allocation7 + $0x4] sm:$0xf]  ;;  %v1762_v10 = vld [vmem:[#allocation8 + $0x24c] sm:$0xf0] }
  0xba   :  { %v268_v39 = vadd.f32 %v267_v31, %v266_v20  ;;  %1098 = vmatpush.bf16.msra.mxu2 %v1705_v37  ;;  %1088 = vmatpush.bf16.msra.mxu1 %v1573_v8  ;;  %v1681_v20 = vor.u32 %v2009_v14, %v1678_v17  ;;  %v2006_v31 = vld [vmem:[#allocation8 + $0x184] sm:$0xf] }
  0xbb   :  { %v271_v40 = vrot.slane %v257_v32, 4  ;;  %v260_v44 = vadd.f32 %v259_v35, %v255_v26  ;;  %v236_v45 = vrot.slane %v235_v36, 2  ;;  %v1822_v26 = vld [vmem:[#allocation8 + $0x2c4] sm:$0xf0]  ;;  %v1669_v37 = vor.u32 %v2006_v31, %v1666_v33  ;;  %v2005_v31 = vld [vmem:[#allocation8 + $0x178] sm:$0xf0] }
  0xbc   :  { %v269_v49 = vrot.slane %v268_v39, 1  ;;  %v214_v52 = vpop.f32.mrf.mxu3  ;;  %v1825_v27 = vor.u32 %v2045_v23, %v1822_v26 }
  0xbd   :  { %v272_v51 = vadd.f32 %v271_v40, %v257_v32  ;;  %v261_v57 = vrot.slane %v260_v44, 2  ;;  %v237_v58 = vadd.f32 %v236_v45, %v235_v36  ;;  %1073 = vmatpush.bf16.msrb.mxu0 %v1501_v54  ;;  %v1477_v36 = vor.u32 %v1958_v28, %v1474_v29  ;;  %v1786_v52 = vld [vmem:[#allocation8 + $0x27c] sm:$0xf0]  ;;  %v1660_v29 = vld [vmem:[#allocation8 + $0x170] sm:$0xf] }
  0xbe   :  { %v270_v0 = vadd.f32 %v269_v49, %v268_v39  ;;  %1099 = vmatpush.bf16.msra.mxu2 %v1693_v61  ;;  %1109 = vmatpush.bf16.msrb.mxu3 %v1825_v27  ;;  %v1813_v40 = vor.u32 %v2042_v34, %v1810_v38  ;;  %v1801_v45 = vor.u32 %v2039_v42, %v1798_v43 }
  0xbf   :  { %v273_v1 = vrot.slane %v272_v51, 2  ;;  %v262_v3 = vadd.f32 %v261_v57, %v260_v44  ;;  %v238_v4 = vrot.slane %v237_v58, 1  ;;  %v1789_v54 = vor.u32 %v2036_v48, %v1786_v52  ;;  %v2029_v48 = vld [vmem:[#allocation8 + $0x238] sm:$0xf0] }
  0xc0   :  { %v284_v6 = vmul.f32 %v270_v0, %v2340_v22 }
  0xc1   :  { %v274_v7 = vadd.f32 %v273_v1, %v272_v51  ;;  %v263_v11 = vrot.slane %v262_v3, 1  ;;  %v239_v12 = vadd.f32 %v238_v4, %v237_v58  ;;  %1074 = vmatpush.bf16.msrb.mxu0 %v1489_v13  ;;  %v2384_v4 = vld [vmem:[#allocation7 + $0x8] sm:$0xf] }
  0xc2   :  { %v2366_v18 = vadd.f32 1e-05, %v284_v6  ;;  %1100 = vmatpush.bf16.msra.mxu2 %v1681_v20  ;;  %1110 = vmatpush.bf16.msrb.mxu3 %v1813_v40  ;;  %v351_v38 = vperm.slane %v2384_v4, 2 }
  0xc3   :  { %v275_v19 = vrot.slane %v274_v7, 1  ;;  %v264_v24 = vadd.f32 %v263_v11, %v262_v3  ;;  %v250_v25 = vmul.f32 %v2340_v22, %v239_v12  ;;  %v337_v12 = vperm.slane %v2382_v30, 1 }
  0xc4   :  { %2094 = vrsqrt.f32 %v2366_v18  ;;  %vm307_vm3 = vweird.f32 %v2366_v18 }
  0xc5   :  { %v276_v53 = vadd.f32 %v275_v19, %v274_v7  ;;  %v283_v32 = vmul.f32 %v264_v24, %v2340_v22  ;;  %v2372_v59 = vsub.f32 %v2354_v16, %v250_v25  ;;  %1075 = vmatpush.bf16.msrb.mxu0 %v1477_v36  ;;  %v350_v19 = vperm.slane %v2384_v4, 1 }
  0xc6   :  { %1101 = vmatpush.bf16.msra.mxu2 %v1669_v37  ;;  %1111 = vmatpush.bf16.msrb.mxu3 %v1801_v45  ;;  %v1564_v45 = vld [vmem:[#allocation8 + $0xb0] sm:$0xf] }
  0xc7   :  { %v285_v35 = vmul.f32 %v276_v53, %v2340_v22  ;;  %v287_v60 = vadd.f32 1e-05, %v283_v32  ;;  %v258_v39 = vmul.f32 %v2372_v59, %v2372_v59  ;;  %v338_v32 = vperm.slane %v2382_v30, 2 }
  0xc9   :  { %v2377_v41 = vadd.f32 1e-05, %v285_v35  ;;  %2096 = vrsqrt.f32 %v287_v60  ;;  %v277_v16 = vrot.slane %v258_v39, 4  ;;  %vm297_vm7 = vweird.f32 %v287_v60 }
  0xca   :  { %v2095_v44 = vpop.eup %2094  ;;  %1112 = vmatpush.bf16.msrb.mxu3 %v1789_v54  ;;  %v349_v35 = vperm.slane %v2384_v4, 0 }
  0xcb   :  { %2098 = vrsqrt.f32 %v2377_v41  ;;  %v302_v46 = vmul.f32 %v2095_v44, %v2366_v18  ;;  %v278_v47 = vadd.f32 %v277_v16, %v258_v39  ;;  %vm308_vm2 = vweird.f32 %v2095_v44  ;;  %v2002_v16 = vld [vmem:[#allocation8 + $0x160] sm:$0xf0] }
  0xcc   :  { %vm309_vm4 = vmor %vm307_vm3, %vm308_vm2  ;;  %v1765_v18 = vor.u32 %v2030_v9, %v1762_v10  ;;  %vm317_vm9 = vweird.f32 %v2377_v41  ;;  %v1996_v9 = vld [vmem:[#allocation8 + $0x130] sm:$0xf0] }
  0xcd   :  { %v303_v49 = vmul.f32 %v2095_v44, %v302_v46  ;;  %v279_v51 = vrot.slane %v278_v47, 2  ;;  %v1981_v46 = vld [vmem:[#allocation8 + $0xb8] sm:$0xf0] }
  0xce   :  { %1113 = vmatpush.bf16.msrb.mxu3 %v1777_v5 }
  0xcf   :  { %v2097_v55 = vpop.eup %2096  ;;  %v304_v56 = vmul.f32 0.5, %v303_v49  ;;  %v280_v57 = vadd.f32 %v279_v51, %v278_v47 }
  0xd0   :  { %v292_v61 = vmul.f32 %v2097_v55, %v287_v60  ;;  %vm298_vm5 = vweird.f32 %v2097_v55  ;;  %v1661_v60 = vor.u32 %v2005_v31, %v1660_v29  ;;  %v2020_v29 = vld [vmem:[#allocation8 + $0x1f0] sm:$0xf0] }
  0xd1   :  { %v2099_v58 = vpop.eup %2098  ;;  %v305_v0 = vsub.f32 1.5, %v304_v56  ;;  %v281_v2 = vrot.slane %v280_v57, 1  ;;  %vm299_vm8 = vmor %vm297_vm7, %vm298_vm5  ;;  %v1636_v56 = vld [vmem:[#allocation8 + $0x140] sm:$0xf] }
  0xd2   :  { %v312_v1 = vmul.f32 %v2099_v58, %v2377_v41  ;;  %v293_v3 = vmul.f32 %v2097_v55, %v292_v61  ;;  %vm318_vm6 = vweird.f32 %v2099_v58  ;;  %1114 = vmatpush.bf16.msrb.mxu3 %v1765_v18  ;;  %v1648_v41 = vld [vmem:[#allocation8 + $0x158] sm:$0xf] }
  0xd3   :  { %v306_v6 = vmul.f32 %v2095_v44, %v305_v0  ;;  %v282_v8 = vadd.f32 %v281_v2, %v280_v57  ;;  %vm319_vm10 = vmor %vm317_vm9, %vm318_vm6  ;;  %v1649_v49 = vor.u32 %v2002_v16, %v1648_v41  ;;  %v1999_v57 = vld [vmem:[#allocation8 + $0x148] sm:$0xf0]  ;;  %v1744_v2 = vld [vmem:[#allocation8 + $0x218] sm:$0xf] }
  0xd4   :  { %v313_v7 = vmul.f32 %v2099_v58, %v312_v1  ;;  %v294_v11 = vmul.f32 0.5, %v293_v3  ;;  %v2026_v3 = vld [vmem:[#allocation8 + $0x220] sm:$0xf0]  ;;  %v1637_v5 = vor.u32 %v1999_v57, %v1636_v56  ;;  %v1852_v41 = vld [vmem:[#allocation8 + $0x2f0] sm:$0xf] }
  0xd5   :  { %v310_v13 = vsel %vm309_vm4, %v2095_v44, %v306_v6  ;;  %v286_v17 = vmul.f32 %v282_v8, %v2340_v22  ;;  %v336_v22 = vperm.slane %v2382_v30, 0  ;;  %v1624_v8 = vld [vmem:[#allocation8 + $0x128] sm:$0xf]  ;;  %v1745_v10 = vor.u32 %v2026_v3, %v1744_v2  ;;  %v2053_v16 = vld [vmem:[#allocation8 + $0x2f8] sm:$0xf0] }
  0xd6   :  { %v314_v14 = vmul.f32 0.5, %v313_v7  ;;  %v332_v20 = vmul.f32 %v310_v13, %v2344_v50  ;;  %v295_v23 = vsub.f32 1.5, %v294_v11  ;;  %v1553_v7 = vor.u32 %v1978_v63, %v1552_v62  ;;  %v1540_v11 = vld [vmem:[#allocation8 + $0x80] sm:$0xf]  ;;  %v1984_v56 = vld [vmem:[#allocation8 + $0xd0] sm:$0xf0] }
  0xd7   :  { %v2391_v25 = vadd.f32 1e-05, %v286_v17  ;;  %v2023_v17 = vld [vmem:[#allocation8 + $0x208] sm:$0xf0]  ;;  %v1492_v62 = vld [vmem:[#allocation8 + $0x20] sm:$0xf] }
  0xd8   :  { %v315_v24 = vsub.f32 1.5, %v314_v14  ;;  %v296_v26 = vmul.f32 %v2097_v55, %v295_v23  ;;  %v345_v53 = vmul.f32 %v337_v12, %v332_v20  ;;  %v1975_v12 = vld [vmem:[#allocation8 + $0x88] sm:$0xf0]  ;;  %v1732_v14 = vld [vmem:[#allocation8 + $0x200] sm:$0xf]  ;;  %v1625_v20 = vor.u32 %v1996_v9, %v1624_v8 }
  0xd9   :  { %2100 = vrsqrt.f32 %v2391_v25  ;;  %vm327_vm12 = vweird.f32 %v2391_v25  ;;  %v1541_v18 = vor.u32 %v1975_v12, %v1540_v11  ;;  %v1684_v2 = vld [vmem:[#allocation8 + $0x1a0] sm:$0xf]  ;;  %v2011_v3 = vld [vmem:[#allocation8 + $0x1a8] sm:$0xf0]  ;;  %v1960_v12 = vld [vmem:[#allocation8 + $0x10] sm:$0xf0] }
  0xda   :  { %v316_v27 = vmul.f32 %v2099_v58, %v315_v24  ;;  %v300_v50 = vsel %vm299_vm8, %v2097_v55, %v296_v26  ;;  %v358_v28 = vadd.f32 %v350_v19, %v345_v53  ;;  %v1565_v55 = vor.u32 %v1981_v46, %v1564_v45  ;;  %v1612_v24 = vld [vmem:[#allocation8 + $0x110] sm:$0xf]  ;;  %v1993_v26 = vld [vmem:[#allocation8 + $0x118] sm:$0xf0] }
  0xdb   :  { %v331_v33 = vmul.f32 %v300_v50, %v2352_v15  ;;  %v339_v19 = vperm.slane %v2382_v30, 3  ;;  %v1972_v50 = vld [vmem:[#allocation8 + $0x70] sm:$0xf0]  ;;  %v1613_v30 = vor.u32 %v1993_v26, %v1612_v24  ;;  %v1685_v9 = vor.u32 %v2011_v3, %v1684_v2  ;;  %v1804_v24 = vld [vmem:[#allocation8 + $0x290] sm:$0xf] }
  0xdc   :  { %v320_v34 = vsel %vm319_vm10, %v2099_v58, %v316_v27  ;;  %v362_v37 = vmax.f32 %v358_v28, 0.0  ;;  %v1733_v27 = vor.u32 %v2023_v17, %v1732_v14  ;;  %v1720_v28 = vld [vmem:[#allocation8 + $0x1e8] sm:$0xf]  ;;  %v2008_v14 = vld [vmem:[#allocation8 + $0x190] sm:$0xf0] }
  0xdd   :  { %v333_v36 = vmul.f32 %v320_v34, %v2357_v21  ;;  %v344_v39 = vmul.f32 %v336_v22, %v331_v33  ;;  %v1756_v21 = vld [vmem:[#allocation8 + $0x230] sm:$0xf]  ;;  %v1528_v22 = vld [vmem:[#allocation8 + $0x68] sm:$0xf]  ;;  %v1600_v33 = vld [vmem:[#allocation8 + $0xf8] sm:$0xf] }
  0xde   :  { %v2401_v40 = vpack.c.bf16 %v362_v37, %v362_v37  ;;  %v1757_v61 = vor.u32 %v2029_v48, %v1756_v21  ;;  %v1990_v34 = vld [vmem:[#allocation8 + $0x100] sm:$0xf0]  ;;  %v1516_v37 = vld [vmem:[#allocation8 + $0x50] sm:$0xf]  ;;  %v1696_v48 = vld [vmem:[#allocation8 + $0x1b8] sm:$0xf] }
  0xdf   :  { %v346_v42 = vmul.f32 %v338_v32, %v333_v36  ;;  %v2101_v43 = vpop.eup %2100  ;;  %v357_v44 = vadd.f32 %v349_v35, %v344_v39  ;;  %v1529_v32 = vor.u32 %v1972_v50, %v1528_v22  ;;  %v1721_v35 = vor.u32 %v2020_v29, %v1720_v28  ;;  %v1966_v21 = vld [vmem:[#allocation8 + $0x40] sm:$0xf0]  ;;  %v1816_v17 = vld [vmem:[#allocation8 + $0x2a8] sm:$0xf]  ;;  %v2041_v26 = vld [vmem:[#allocation8 + $0x298] sm:$0xf0] }
  0xe0   :  { %v322_v15 = vmul.f32 %v2101_v43, %v2391_v25  ;;  %1037 = vmatmul.bf16.vlgmr.msrb.gmra.mxu1 %v2401_v40  ;;  %vm328_vm11 = vweird.f32 %v2101_v43  ;;  %v352_v25 = vperm.slane %v2384_v4, 3  ;;  %v1601_v4 = vor.u32 %v1990_v34, %v1600_v33  ;;  %v2038_v22 = vld [vmem:[#allocation8 + $0x280] sm:$0xf0]  ;;  %v2035_v28 = vld [vmem:[#allocation8 + $0x268] sm:$0xf0]  ;;  %v2060_v33 = vld [vmem:[#allocation10 + $0x30] sm:$0xff] }
  0xe1   :  { %v359_v47 = vadd.f32 %v351_v38, %v346_v42  ;;  %1133 = vmatpush.bf16.msrb.mxu1 %v1661_v60  ;;  %v361_v51 = vmax.f32 %v357_v44, 0.0  ;;  %vm329_vm13 = vmor %vm327_vm12, %vm328_vm11  ;;  %v1708_v38 = vld [vmem:[#allocation8 + $0x1d0] sm:$0xf]  ;;  %v2017_v60 = vld [vmem:[#allocation8 + $0x1d8] sm:$0xf0] }
  0xe2   :  { %v323_v52 = vmul.f32 %v2101_v43, %v322_v15  ;;  %v1588_v42 = vld [vmem:[#allocation8 + $0xe0] sm:$0xf]  ;;  %v1709_v46 = vor.u32 %v2017_v60, %v1708_v38  ;;  %v1504_v15 = vld [vmem:[#allocation8 + $0x38] sm:$0xf]  ;;  %v1768_v29 = vld [vmem:[#allocation8 + $0x248] sm:$0xf] }
  0xe3   :  { %v363_v54 = vmax.f32 %v359_v47, 0.0  ;;  %v2405_v58 = vpack.c.bf16 %v361_v51, %v361_v51  ;;  %v1853_v47 = vor.u32 %v2053_v16, %v1852_v41  ;;  %v1505_v57 = vor.u32 %v1966_v21, %v1504_v15  ;;  %v2057_v34 = vld [vmem:[#allocation10 + $0x18] sm:$0xff]  ;;  %v2067_v38 = vld [vmem:[#allocation10 + $0x68] sm:$0xff]  ;;  %v2054_v60 = vld [vmem:[#allocation10] sm:$0xff] }
  0xe4   :  { %v324_v0 = vmul.f32 0.5, %v323_v52  ;;  %v1840_v52 = vld [vmem:[#allocation8 + $0x2d8] sm:$0xf]  ;;  %v2075_v15 = vld [vmem:[#allocation10 + $0xa8] sm:$0xff]  ;;  %v99_v21 = vld [vmem:[#allocation7 + $0xc] sm:$0x7] }
  0xe5   :  { %v2407_v1 = vpack.c.bf16 %v363_v54, %v363_v54  ;;  %1134 = vmatpush.bf16.msrb.mxu1 %v1649_v49  ;;  %1024 = vmatmul.bf16.vlgmr.msra.gmra.mxu0 %v2405_v58  ;;  %v2014_v49 = vld [vmem:[#allocation8 + $0x1c0] sm:$0xf0]  ;;  %v2065_v41 = vld [vmem:[#allocation10 + $0x58] sm:$0xff] }
  0xe6   :  { %v325_v6 = vsub.f32 1.5, %v324_v0  ;;  %1120 = vmatpush.bf16.msra.mxu0 %v1565_v55  ;;  %v2050_v54 = vld [vmem:[#allocation8 + $0x2e0] sm:$0xf0]  ;;  %v1576_v55 = vld [vmem:[#allocation8 + $0xc8] sm:$0xf]  ;;  %v2077_v16 = vld [vmem:[#allocation10 + $0xb8] sm:$0xff] }
  0xe7   :  { %1050 = vmatmul.bf16.vlgmr.msrb.gmra.mxu2 %v2407_v1  ;;  %v1841_v63 = vor.u32 %v2050_v54, %v1840_v52  ;;  %v1963_v0 = vld [vmem:[#allocation8 + $0x28] sm:$0xf0]  ;;  %v498_v52 = vperm.slane %v99_v21, 0 }
  0xe8   :  { %1146 = vmatpush.bf16.msrb.mxu2 %v1757_v61  ;;  %v326_v13 = vmul.f32 %v2101_v43, %v325_v6  ;;  %v1697_v61 = vor.u32 %v2014_v49, %v1696_v48  ;;  %v1828_v6 = vld [vmem:[#allocation8 + $0x2c0] sm:$0xf]  ;;  %v1493_v8 = vor.u32 %v1963_v0, %v1492_v62 }
  0xe9   :  { %1135 = vmatpush.bf16.msrb.mxu1 %v1637_v5  ;;  %v1577_v5 = vor.u32 %v1984_v56, %v1576_v55  ;;  %v2062_v49 = vld [vmem:[#allocation10 + $0x40] sm:$0xff]  ;;  %v2073_v55 = vld [vmem:[#allocation10 + $0x98] sm:$0xff] }
  0xea   :  { %v330_v23 = vsel %vm329_vm13, %v2101_v43, %v326_v13  ;;  %1121 = vmatpush.bf16.msra.mxu0 %v1553_v7  ;;  %v1987_v43 = vld [vmem:[#allocation8 + $0xe8] sm:$0xf0]  ;;  %v1672_v13 = vld [vmem:[#allocation8 + $0x188] sm:$0xf] }
  0xeb   :  { %v334_v53 = vmul.f32 %v330_v23, %v2372_v59  ;;  %v1969_v59 = vld [vmem:[#allocation8 + $0x58] sm:$0xf0]  ;;  %v1589_v51 = vor.u32 %v1987_v43, %v1588_v42  ;;  %v2047_v7 = vld [vmem:[#allocation8 + $0x2c8] sm:$0xf0]  ;;  %v1673_v23 = vor.u32 %v2008_v14, %v1672_v13  ;;  %v2064_v43 = vld [vmem:[#allocation10 + $0x50] sm:$0xff] }
  0xec   :  { %1147 = vmatpush.bf16.msrb.mxu2 %v1745_v10  ;;  %v1517_v45 = vor.u32 %v1969_v59, %v1516_v37  ;;  %v1480_v10 = vld [vmem:[#allocation8 + $0x8] sm:$0xf]  ;;  %v1829_v11 = vor.u32 %v2047_v7, %v1828_v6  ;;  %v2068_v37 = vld [vmem:[#allocation10 + $0x70] sm:$0xff] }
  0xed   :  { %v347_v31 = vmul.f32 %v339_v19, %v334_v53  ;;  %1136 = vmatpush.bf16.msrb.mxu1 %v1625_v20  ;;  %v2044_v19 = vld [vmem:[#allocation8 + $0x2b0] sm:$0xf0]  ;;  %v1481_v20 = vor.u32 %v1960_v12, %v1480_v10  ;;  %v1805_v53 = vor.u32 %v2041_v26, %v1804_v24  ;;  %v2055_v59 = vld [vmem:[#allocation10 + $0x8] sm:$0xff]  ;;  %v2070_v10 = vld [vmem:[#allocation10 + $0x80] sm:$0xff] }
  0xee   :  { %1122 = vmatpush.bf16.msra.mxu0 %v1541_v18  ;;  %v1817_v18 = vor.u32 %v2044_v19, %v1816_v17 }
  0xef   :  { %v360_v36 = vadd.f32 %v352_v25, %v347_v31  ;;  %v1780_v25 = vld [vmem:[#allocation8 + $0x260] sm:$0xf]  ;;  %v2032_v31 = vld [vmem:[#allocation8 + $0x250] sm:$0xf0] }
  0xf0   :  { %1148 = vmatpush.bf16.msrb.mxu2 %v1733_v27  ;;  %1089 = vmatmul.bf16.vlgmr.msra.gmra.mxu1 %v2401_v40  ;;  %v1792_v27 = vld [vmem:[#allocation8 + $0x278] sm:$0xf] }
  0xf1   :  { %1137 = vmatpush.bf16.msrb.mxu1 %v1613_v30  ;;  %v364_v39 = vmax.f32 %v360_v36, 0.0  ;;  %v1793_v50 = vor.u32 %v2038_v22, %v1792_v27  ;;  %v1769_v30 = vor.u32 %v2032_v31, %v1768_v29  ;;  %v2056_v36 = vld [vmem:[#allocation10 + $0x10] sm:$0xff] }
  0xf2   :  { %1123 = vmatpush.bf16.msra.mxu0 %v1529_v32  ;;  %v2061_v32 = vld [vmem:[#allocation10 + $0x38] sm:$0xff] }
  0xf3   :  { %v2416_v44 = vpack.c.bf16 %v364_v39, %v364_v39 }
  0xf4   :  { %1149 = vmatpush.bf16.msrb.mxu2 %v1721_v35  ;;  %v2069_v35 = vld [vmem:[#allocation10 + $0x78] sm:$0xff] }
  0xf5   :  { %1138 = vmatpush.bf16.msrb.mxu1 %v1601_v4  ;;  %1063 = vmatmul.bf16.vlgmr.msra.gmra.mxu3 %v2416_v44  ;;  %v2066_v4 = vld [vmem:[#allocation10 + $0x60] sm:$0xff] }
  0xf6   :  { %1076 = vmatmul.bf16.vlgmr.msrb.gmra.mxu0 %v2405_v58  ;;  %1159 = vmatpush.bf16.msra.mxu3 %v1853_v47 }
  0xf7   :  { %1102 = vmatmul.bf16.vlgmr.msra.gmra.mxu2 %v2407_v1  ;;  %1124 = vmatpush.bf16.msra.mxu0 %v1517_v45 }
  0xf8   :  { %1150 = vmatpush.bf16.msrb.mxu2 %v1709_v46  ;;  %v2063_v46 = vld [vmem:[#allocation10 + $0x48] sm:$0xff] }
  0xf9   :  { %1139 = vmatpush.bf16.msrb.mxu1 %v1589_v51  ;;  %v2074_v51 = vld [vmem:[#allocation10 + $0xa0] sm:$0xff] }
  0xfa   :  { %1160 = vmatpush.bf16.msra.mxu3 %v1841_v63 }
  0xfb   :  { %1125 = vmatpush.bf16.msra.mxu0 %v1505_v57 }
  0xfc   :  { %1151 = vmatpush.bf16.msrb.mxu2 %v1697_v61  ;;  %v2072_v61 = vld [vmem:[#allocation10 + $0x90] sm:$0xff] }
  0xfd   :  { %1140 = vmatpush.bf16.msrb.mxu1 %v1577_v5  ;;  %v2071_v5 = vld [vmem:[#allocation10 + $0x88] sm:$0xff] }
  0xfe   :  { %1161 = vmatpush.bf16.msra.mxu3 %v1829_v11  ;;  %v499_v11 = vperm.slane %v99_v21, 1 }
  0xff   :  { %1126 = vmatpush.bf16.msra.mxu0 %v1493_v8 }
 0x100   :  { %1152 = vmatpush.bf16.msrb.mxu2 %v1685_v9  ;;  %1141 = vmatmul.bf16.vlgmr.msrb.gmra.mxu1 %v2401_v40  ;;  %v1781_v40 = vor.u32 %v2035_v28, %v1780_v25  ;;  %v500_v28 = vperm.slane %v99_v21, 2 }
 0x101   :  { %1386 = vmatpush.bf16.msra.mxu1 %v2069_v35 }
 0x102   :  { %1162 = vmatpush.bf16.msra.mxu3 %v1817_v18 }
 0x103   :  { %1127 = vmatpush.bf16.msra.mxu0 %v1481_v20 }
 0x104   :  { %1153 = vmatpush.bf16.msrb.mxu2 %v1673_v23 }
 0x105   :  { %1115 = vmatmul.bf16.vlgmr.msrb.gmra.mxu3 %v2416_v44  ;;  %1387 = vmatpush.bf16.msra.mxu1 %v2068_v37 }
 0x106   :  { %1128 = vmatmul.bf16.vlgmr.msra.gmra.mxu0 %v2405_v58  ;;  %1163 = vmatpush.bf16.msra.mxu3 %v1805_v53  ;;  %v2059_v58 = vld [vmem:[#allocation10 + $0x28] sm:$0xff] }
 0x107   :  { %1154 = vmatmul.bf16.vlgmr.msrb.gmra.mxu2 %v2407_v1  ;;  %1373 = vmatpush.bf16.msrb.mxu0 %v2061_v32  ;;  %v2058_v1 = vld [vmem:[#allocation10 + $0x20] sm:$0xff] }
 0x108   :  { %1399 = vmatpush.bf16.msra.mxu2 %v2077_v16 }
 0x109   :  { %1388 = vmatpush.bf16.msra.mxu1 %v2067_v38 }
 0x10a   :  { %1164 = vmatpush.bf16.msra.mxu3 %v1793_v50 }
 0x10b   :  { %1374 = vmatpush.bf16.msrb.mxu0 %v2060_v33 }
 0x10d   :  { %1389 = vmatpush.bf16.msra.mxu1 %v2066_v4 }
 0x10e   :  { %1165 = vmatpush.bf16.msra.mxu3 %v1781_v40 }
 0x10f   :  { %1375 = vmatpush.bf16.msrb.mxu0 %v2059_v58 }
 0x111   :  { %1390 = vmatpush.bf16.msra.mxu1 %v2065_v41 }
 0x112   :  { %1166 = vmatpush.bf16.msra.mxu3 %v1769_v30 }
 0x113   :  { %1376 = vmatpush.bf16.msrb.mxu0 %v2058_v1 }
 0x115   :  { %1167 = vmatmul.bf16.vlgmr.msra.gmra.mxu3 %v2416_v44  ;;  %v2076_v44 = vld [vmem:[#allocation10 + $0xb0] sm:$0xff]  ;;  %1391 = vmatpush.bf16.msra.mxu1 %v2064_v43 }
 0x116   :  { %1400 = vmatpush.bf16.msra.mxu2 %v2076_v44 }
 0x117   :  { %1377 = vmatpush.bf16.msrb.mxu0 %v2057_v34 }
 0x119   :  { %1392 = vmatpush.bf16.msra.mxu1 %v2063_v46 }
 0x11a   :  { %1401 = vmatpush.bf16.msra.mxu2 %v2075_v15 }
 0x11b   :  { %1378 = vmatpush.bf16.msrb.mxu0 %v2056_v36 }
 0x11d   :  { %1393 = vmatpush.bf16.msra.mxu1 %v2062_v49 }
 0x11e   :  { %1402 = vmatpush.bf16.msra.mxu2 %v2074_v51 }
 0x11f   :  { %1379 = vmatpush.bf16.msrb.mxu0 %v2055_v59 }
 0x122   :  { %1403 = vmatpush.bf16.msra.mxu2 %v2073_v55 }
 0x123   :  { %1380 = vmatpush.bf16.msrb.mxu0 %v2054_v60  ;;  %v2091_v60 = vld [vmem:[#allocation7 + $0xf] ss:$0 sm:$0xff] }
 0x126   :  { %1404 = vmatpush.bf16.msra.mxu2 %v2072_v61 }
 0x12a   :  { %1405 = vmatpush.bf16.msra.mxu2 %v2071_v5 }
 0x12e   :  { %1406 = vmatpush.bf16.msra.mxu2 %v2070_v10 }
 0x15d   :  { %v1038_v39 = vpop.f32.mrf.mxu1 }
 0x162   :  { %v1025_v42 = vpop.f32.mrf.mxu0 }
 0x163   :  { %v1026_v56 = vadd.f32 %v1025_v42, %v498_v52 }
 0x165   :  { %v1040_v45 = vpop.f32.mrf.mxu1  ;;  %v1039_v63 = vadd.f32 %v1038_v39, %v1026_v56 }
 0x16a   :  { %v1051_v47 = vpop.f32.mrf.mxu2  ;;  %v1027_v48 = vpop.f32.mrf.mxu0 }
 0x16b   :  { %v1052_v2 = vadd.f32 %v1051_v47, %v1039_v63 }
 0x16d   :  { %v1090_v54 = vpop.f32.mrf.mxu1 }
 0x172   :  { %v1053_v57 = vpop.f32.mrf.mxu2 }
 0x173   :  { %v1077_v62 = vpop.f32.mrf.mxu0 }
 0x174   :  { %v1078_v17 = vadd.f32 %v1077_v62, %v499_v11 }
 0x175   :  { %v1092_v0 = vpop.f32.mrf.mxu1 }
 0x176   :  { %v1091_v23 = vadd.f32 %v1090_v54, %v1078_v17 }
 0x178   :  { %v1064_v3 = vpop.f32.mrf.mxu3 }
 0x179   :  { %v1065_v6 = vadd.f32 %v1064_v3, %v1052_v2 }
 0x17a   :  { %v1103_v7 = vpop.f32.mrf.mxu2 }
 0x17b   :  { %v1172_v8 = vmax.f32 %v1065_v6, 0.0  ;;  %v1079_v9 = vpop.f32.mrf.mxu0  ;;  %v1104_v24 = vadd.f32 %v1103_v7, %v1091_v23 }
 0x17d   :  { %v1175_v12 = vpack.c.bf16 %v1172_v8, %v1172_v8  ;;  %v1142_v13 = vpop.f32.mrf.mxu1 }
 0x17f   :  { %1381 = vmatmul.bf16.vlgmr.msrb.gmra.mxu0 %v1175_v12 }
 0x180   :  { %v1066_v14 = vpop.f32.mrf.mxu3 }
 0x182   :  { %v1105_v19 = vpop.f32.mrf.mxu2 }
 0x183   :  { %v1129_v20 = vpop.f32.mrf.mxu0 }
 0x184   :  { %v1130_v31 = vadd.f32 %v1129_v20, %v500_v28 }
 0x185   :  { %v1144_v18 = vpop.f32.mrf.mxu1 }
 0x186   :  { %v1143_v30 = vadd.f32 %v1142_v13, %v1130_v31 }
 0x188   :  { %v1116_v26 = vpop.f32.mrf.mxu3 }
 0x189   :  { %v1117_v53 = vadd.f32 %v1116_v26, %v1104_v24 }
 0x18a   :  { %v1155_v27 = vpop.f32.mrf.mxu2 }
 0x18b   :  { %v1173_v22 = vmax.f32 %v1117_v53, 0.0  ;;  %v1131_v50 = vpop.f32.mrf.mxu0  ;;  %v1156_v32 = vadd.f32 %v1155_v27, %v1143_v30 }
 0x18d   :  { %v1176_v25 = vpack.c.bf16 %v1173_v22, %v1173_v22 }
 0x18f   :  { %1394 = vmatmul.bf16.vlgmr.msra.gmra.mxu1 %v1176_v25 }
 0x190   :  { %v1118_v40 = vpop.f32.mrf.mxu3 }
 0x192   :  { %v1157_v29 = vpop.f32.mrf.mxu2 }
 0x198   :  { %v1168_v33 = vpop.f32.mrf.mxu3 }
 0x199   :  { %v1169_v58 = vadd.f32 %v1168_v33, %v1156_v32 }
 0x19b   :  { %v1174_v1 = vmax.f32 %v1169_v58, 0.0 }
 0x19d   :  { %v1177_v34 = vpack.c.bf16 %v1174_v1, %v1174_v1 }
 0x19f   :  { %1407 = vmatmul.bf16.vlgmr.msra.gmra.mxu2 %v1177_v34 }
 0x1a0   :  { %v1170_v35 = vpop.f32.mrf.mxu3 }
 0x1fc   :  { %v1382_v36 = vpop.f32.mrf.mxu0 }
 0x1fd   :  { %v1383_v4 = vadd.f32 %v2091_v60, %v1382_v36 }
 0x204   :  { %v1384_v37 = vpop.f32.mrf.mxu0 }
 0x20c   :  { %v1395_v59 = vpop.f32.mrf.mxu1 }
 0x20d   :  { %v1396_v39 = vadd.f32 %v1395_v59, %v1383_v4 }
 0x214   :  { %v1397_v38 = vpop.f32.mrf.mxu1 }
 0x222   :  { %v1408_v41 = vpop.f32.mrf.mxu2 }
 0x223   :  { %v1409_v16 = vadd.f32 %v1408_v41, %v1396_v39 }
 0x225   :  { %2102 = vtanh.f32 %v1409_v16 }
 0x22a   :  { %v1410_v42 = vpop.f32.mrf.mxu2 }
 0x22b   :  { %v2103_v43 = vpop.eup %2102 }
 0x22c   :  { %v1413_v44 = vpack.c.bf16 %v2103_v43, %v2103_v43 }
 0x22e   :  { %1414 = vst [vmem:[#allocation11] sm:$0xf] %v1413_v44 }
 0x22f   :  { %1425 = dma.vmem_to_hbm [thread:$0]  %s1421_s4, 64, %s1423_s23, [#allocation4]  }
 0x230   :  { %2254 = dma.done.wait [#allocation4], 64  }
 0x231   :  { %2255 = vsyncadd [#allocation4], 4294967232 }
 0x232   :  { %1430 = vsyncpa [#allocation3], 1 }
 0x233   :  { %1431 = vsyncpa [#allocation6], 1 }
 0x234   :  { %1432 = vsyncpa [#allocation9], 1 }
 0x235   :  { %1433 = vsyncpa [#allocation4], 1 }

// kernel: tpu_custom_call.1
= control target key start
LH: loop header
LB: loop body
LE: loop exit
PB: predicated region body
PF: predicated region fallthrough
CT: control target
= control target key end

     0   :  { %10 = vsyncpa [#allocation3], 0  ;;  %s2429_s0 = inlined_call_operand.hbm [shape: f32[1,8,32], index: 0, kind: input, shape index: {}]   ;;  %s2430_s1 = inlined_call_operand.hbm [shape: bf16[32,512], index: 1, kind: input, shape index: {}]   ;;  %s2431_s2 = inlined_call_operand.hbm [shape: f32[1,2048], index: 2, kind: input, shape index: {}]   ;;  %s2432_s3 = inlined_call_operand.hbm [shape: bf16[512,384], index: 3, kind: input, shape index: {}]   ;;  %s2433_s4 = inlined_call_operand.hbm [shape: bf16[384,128], index: 4, kind: input, shape index: {}]   ;;  %s2434_s5 = inlined_call_operand.hbm [shape: bf16[1,8,128], index: 5, kind: output, shape index: {}]  }
   0x1   :  { %11 = vsyncpa [#allocation6], 0 }
   0x2   :  { %12 = vsyncpa [#allocation9], 0  ;;  %s29_s20 = sshll.u32 %s2430_s1, 4  ;;  %s30_s20 = int_to_ptr.hbm [resolvable:$true] %s29_s20 }
   0x3   :  { %13 = vsyncpa [#allocation4], 0  ;;  %s2256_s21 = smov [#allocation5]   ;;  %s53_s25 = sshll.u32 %s2432_s3, 4  ;;  %s54_s25 = int_to_ptr.hbm [resolvable:$true] %s53_s25 }
   0x4   :  { %s31_s22 = sshll.u32 %s2256_s21, 4  ;;  %s2257_s26 = smov 256   ;;  %s32_s22 = int_to_ptr.vmem [resolvable:$true] %s31_s22 }
   0x5   :  { %s2258_s27 = smov 16   ;;  %s2259_s28 = smov [#allocation8]  }
   0x6   :  { %37 = dma.hbm_to_vmem [thread:$0]  %s30_s20, 1024, %s32_s22, [#allocation6], %s2257_s26, %s2257_s26, %s2258_s27  }
   0x7   :  { %s55_s29 = sshll.u32 %s2259_s28, 4  ;;  %s2260_s30 = smov 192   ;;  %s56_s29 = int_to_ptr.vmem [resolvable:$true] %s55_s29 }
   0x8   :  { %s2261_s6 = smov 12   ;;  %s19_s8 = sshll.u32 %s2429_s0, 4  ;;  %s20_s8 = int_to_ptr.hbm [resolvable:$true] %s19_s8 }
   0x9   :  { %61 = dma.hbm_to_vmem [thread:$0]  %s54_s25, 12288, %s56_s29, [#allocation9], %s2260_s30, %s2260_s30, %s2261_s6  }
   0xa   :  { %s2262_s9 = smov [#allocation2]   ;;  %s43_s12 = sshll.u32 %s2431_s2, 4  ;;  %s44_s12 = int_to_ptr.hbm [resolvable:$true] %s43_s12 }
   0xb   :  { %s21_s10 = sshll.u32 %s2262_s9, 4  ;;  %s2263_s13 = smov [#allocation7]   ;;  %s22_s10 = int_to_ptr.vmem [resolvable:$true] %s21_s10 }
   0xc   :  { %24 = dma.hbm_to_vmem [thread:$0]  %s20_s8, 128, %s22_s10, [#allocation3]  }
   0xd   :  { %s45_s14 = sshll.u32 %s2263_s13, 4  ;;  %s66_s17 = sshll.u32 %s2433_s4, 4  ;;  %s46_s14 = int_to_ptr.vmem [resolvable:$true] %s45_s14  ;;  %s67_s17 = int_to_ptr.hbm [resolvable:$true] %s66_s17 }
   0xe   :  { %48 = dma.hbm_to_vmem [thread:$0]  %s44_s12, 256, %s46_s14, [#allocation6]  }
   0xf   :  { %s2264_s0 = smov [#allocation10]   ;;  %s2265_s19 = smov 64  }
  0x10   :  { %s68_s18 = sshll.u32 %s2264_s0, 4  ;;  %s2266_s20 = smov 4   ;;  %s69_s18 = int_to_ptr.vmem [resolvable:$true] %s68_s18 }
  0x11   :  { %74 = dma.hbm_to_vmem [thread:$0]  %s67_s17, 3072, %s69_s18, [#allocation9], %s2265_s19, %s2265_s19, %s2266_s20  }
  0x12   :  { %2248 = dma.done.wait [#allocation3], 128  }
  0x13   :  { %2249 = vsyncadd [#allocation3], 4294967168 }
  0x14   :  { %2250 = dma.done.wait [#allocation6], 1280  }
  0x15   :  { %2251 = vsyncadd [#allocation6], 4294966016 }
  0x16   :  { %2252 = dma.done.wait [#allocation9], 15360  }
  0x17   :  { %2253 = vsyncadd [#allocation9], 4294951936  ;;  %v1452_v0 = vld [vmem:[#allocation5 + $0x20] sm:$0xf]  ;;  %v1956_v1 = vld [vmem:[#allocation5 + $0x2c] sm:$0xf0] }
  0x18   :  { %v1954_v2 = vld [vmem:[#allocation5 + $0x24] sm:$0xf]  ;;  %v1453_v3 = vor.u32 %v1956_v1, %v1452_v0  ;;  %v1454_v4 = vld [vmem:[#allocation5 + $0x30] sm:$0xf0]  ;;  %v1460_v5 = vld [vmem:[#allocation5 + $0x28] sm:$0xf] }
  0x19   :  { %v1957_v6 = vld [vmem:[#allocation5 + $0x34] sm:$0xf0]  ;;  %v1457_v7 = vor.u32 %v1954_v2, %v1454_v4  ;;  %v1436_v9 = vld [vmem:[#allocation5] sm:$0xf]  ;;  %v1952_v10 = vld [vmem:[#allocation5 + $0xc] sm:$0xf0] }
  0x1a   :  { %v1461_v8 = vor.u32 %v1957_v6, %v1460_v5  ;;  %v1950_v11 = vld [vmem:[#allocation5 + $0x4] sm:$0xf]  ;;  %170 = vmatpush.bf16.msra.mxu3 %v1453_v3  ;;  %v1437_v12 = vor.u32 %v1952_v10, %v1436_v9  ;;  %v1438_v13 = vld [vmem:[#allocation5 + $0x10] sm:$0xf0]  ;;  %v1444_v14 = vld [vmem:[#allocation5 + $0x8] sm:$0xf] }
  0x1b   :  { %v1953_v15 = vld [vmem:[#allocation5 + $0x14] sm:$0xf0]  ;;  %183 = vmatpush.bf16.msra.mxu1 %v1457_v7  ;;  %v1441_v16 = vor.u32 %v1950_v11, %v1438_v13  ;;  %v1955_v19 = vld [vmem:[#allocation5 + $0x2c] sm:$0xf]  ;;  %v1462_v20 = vld [vmem:[#allocation5 + $0x38] sm:$0xf0] }
  0x1c   :  { %196 = vmatpush.bf16.msra.mxu2 %v1461_v8  ;;  %v1445_v17 = vor.u32 %v1953_v15, %v1444_v14  ;;  %v101_v18 = vld [vmem:[#allocation2] sm:$0xff]  ;;  %v1465_v21 = vor.u32 %v1955_v19, %v1462_v20  ;;  %v1951_v23 = vld [vmem:[#allocation5 + $0xc] sm:$0xf]  ;;  %vm160_vm0 = vcmask 261120   ;;  %v2004_v27 = vld [vmem:[#allocation8 + $0x170] sm:$0xf0] }
  0x1d   :  { %v102_v22 = vpack.c.bf16 %v101_v18, %v101_v18  ;;  %v1446_v24 = vld [vmem:[#allocation5 + $0x18] sm:$0xf0]  ;;  %v1652_v26 = vld [vmem:[#allocation8 + $0x168] sm:$0xf]  ;;  %v1640_v29 = vld [vmem:[#allocation8 + $0x150] sm:$0xf] }
  0x1e   :  { %171 = vmatpush.bf16.msra.mxu3 %v1437_v12  ;;  %v1449_v25 = vor.u32 %v1951_v23, %v1446_v24  ;;  %v1653_v28 = vor.u32 %v2004_v27, %v1652_v26  ;;  %v2001_v30 = vld [vmem:[#allocation8 + $0x158] sm:$0xf0]  ;;  %v1556_v32 = vld [vmem:[#allocation8 + $0xa8] sm:$0xf]  ;;  %v1980_v33 = vld [vmem:[#allocation8 + $0xb0] sm:$0xf0] }
  0x1f   :  { %184 = vmatpush.bf16.msra.mxu1 %v1441_v16  ;;  %v1641_v31 = vor.u32 %v2001_v30, %v1640_v29  ;;  %v1748_v34 = vld [vmem:[#allocation8 + $0x228] sm:$0xf]  ;;  %v1557_v35 = vor.u32 %v1980_v33, %v1556_v32  ;;  %v2028_v36 = vld [vmem:[#allocation8 + $0x230] sm:$0xf0]  ;;  %v1628_v38 = vld [vmem:[#allocation8 + $0x138] sm:$0xf] }
  0x20   :  { %197 = vmatpush.bf16.msra.mxu2 %v1445_v17  ;;  %v1749_v37 = vor.u32 %v2028_v36, %v1748_v34  ;;  %v1998_v39 = vld [vmem:[#allocation8 + $0x140] sm:$0xf0]  ;;  %v1544_v41 = vld [vmem:[#allocation8 + $0x90] sm:$0xf]  ;;  %v1977_v42 = vld [vmem:[#allocation8 + $0x98] sm:$0xf0] }
  0x21   :  { %1466 = vmatmul.msk.bf16.vlgmr.msra.gmra.mxu3 %vm160_vm0, %v102_v22  ;;  %1016 = vmatpush.bf16.msra.mxu0 %v1557_v35  ;;  %v1629_v40 = vor.u32 %v1998_v39, %v1628_v38  ;;  %v1736_v43 = vld [vmem:[#allocation8 + $0x210] sm:$0xf]  ;;  %v1545_v44 = vor.u32 %v1977_v42, %v1544_v41  ;;  %v2025_v45 = vld [vmem:[#allocation8 + $0x218] sm:$0xf0]  ;;  %v2267_v46 = vmov 8.0   ;;  %s2268_s2 = smov [#allocation11]  }
  0x22   :  { %209 = vmatpush.bf16.msrb.mxu3 %v1465_v21  ;;  %1467 = vmatmul.msk.bf16.vlgmr.msra.gmra.mxu1 %vm160_vm0, %v102_v22  ;;  %2092 = vrcp.f32 %v2267_v46  ;;  %v1737_v47 = vor.u32 %v2025_v45, %v1736_v43  ;;  %v1616_v48 = vld [vmem:[#allocation8 + $0x120] sm:$0xf]  ;;  %v1995_v49 = vld [vmem:[#allocation8 + $0x128] sm:$0xf0]  ;;  %v1532_v51 = vld [vmem:[#allocation8 + $0x78] sm:$0xf] }
  0x23   :  { %1468 = vmatmul.msk.bf16.vlgmr.msra.gmra.mxu2 %vm160_vm0, %v102_v22  ;;  %1029 = vmatpush.bf16.msrb.mxu1 %v1653_v28  ;;  %v1617_v50 = vor.u32 %v1995_v49, %v1616_v48  ;;  %v1974_v52 = vld [vmem:[#allocation8 + $0x80] sm:$0xf0]  ;;  %v1724_v53 = vld [vmem:[#allocation8 + $0x1f8] sm:$0xf]  ;;  %v1604_v57 = vld [vmem:[#allocation8 + $0x108] sm:$0xf] }
  0x24   :  { %1042 = vmatpush.bf16.msrb.mxu2 %v1749_v37  ;;  %v1533_v54 = vor.u32 %v1974_v52, %v1532_v51  ;;  %v2022_v55 = vld [vmem:[#allocation8 + $0x200] sm:$0xf0]  ;;  %v1992_v58 = vld [vmem:[#allocation8 + $0x110] sm:$0xf0]  ;;  %v1520_v61 = vld [vmem:[#allocation8 + $0x60] sm:$0xf] }
  0x25   :  { %1017 = vmatpush.bf16.msra.mxu0 %v1545_v44  ;;  %v1725_v56 = vor.u32 %v2022_v55, %v1724_v53  ;;  %v1605_v59 = vor.u32 %v1992_v58, %v1604_v57  ;;  %v1971_v62 = vld [vmem:[#allocation8 + $0x68] sm:$0xf0]  ;;  %v1712_v63 = vld [vmem:[#allocation8 + $0x1e0] sm:$0xf]  ;;  %v1592_v3 = vld [vmem:[#allocation8 + $0xf0] sm:$0xf] }
  0x26   :  { %210 = vmatpush.bf16.msrb.mxu3 %v1449_v25  ;;  %v1521_v0 = vor.u32 %v1971_v62, %v1520_v61  ;;  %v2019_v1 = vld [vmem:[#allocation8 + $0x1e8] sm:$0xf0]  ;;  %v1989_v4 = vld [vmem:[#allocation8 + $0xf8] sm:$0xf0]  ;;  %v2316_v5 = vld [vmem:[#allocation7] sm:$0xf] }
  0x27   :  { %1030 = vmatpush.bf16.msrb.mxu1 %v1641_v31  ;;  %v1713_v2 = vor.u32 %v2019_v1, %v1712_v63  ;;  %v1593_v7 = vor.u32 %v1989_v4, %v1592_v3  ;;  %v1508_v8 = vld [vmem:[#allocation8 + $0x48] sm:$0xf]  ;;  %v1968_v9 = vld [vmem:[#allocation8 + $0x50] sm:$0xf0]  ;;  %v113_v15 = vperm.slane %v2316_v5, 1  ;;  %v112_v35 = vperm.slane %v2316_v5, 0 }
  0x28   :  { %1043 = vmatpush.bf16.msrb.mxu2 %v1737_v47  ;;  %v2314_v60 = vpop.eup %2092  ;;  %v1700_v10 = vld [vmem:[#allocation8 + $0x1c8] sm:$0xf]  ;;  %v1509_v11 = vor.u32 %v1968_v9, %v1508_v8  ;;  %v2016_v12 = vld [vmem:[#allocation8 + $0x1d0] sm:$0xf0]  ;;  %v1580_v18 = vld [vmem:[#allocation8 + $0xd8] sm:$0xf] }
  0x29   :  { %1018 = vmatpush.bf16.msra.mxu0 %v1533_v54  ;;  %v241_v6 = vmul.f32 8.0, %v2314_v60  ;;  %v1844_v13 = vld [vmem:[#allocation8 + $0x2e8] sm:$0xf]  ;;  %v2052_v14 = vld [vmem:[#allocation8 + $0x2f0] sm:$0xf0]  ;;  %v1701_v16 = vor.u32 %v2016_v12, %v1700_v10  ;;  %vm245_vm1 = vweird.f32 %v2314_v60  ;;  %s1420_s4 = sshll.u32 %s2268_s2, 4  ;;  %s1421_s4 = int_to_ptr.vmem [resolvable:$true] %s1420_s4 }
  0x2a   :  { %v1845_v17 = vor.u32 %v2052_v14, %v1844_v13  ;;  %v1986_v19 = vld [vmem:[#allocation8 + $0xe0] sm:$0xf0]  ;;  %v1965_v23 = vld [vmem:[#allocation8 + $0x38] sm:$0xf0]  ;;  %v1688_v24 = vld [vmem:[#allocation8 + $0x1b0] sm:$0xf] }
  0x2b   :  { %1031 = vmatpush.bf16.msrb.mxu1 %v1629_v40  ;;  %v242_v20 = vsub.f32 1.0, %v241_v6  ;;  %v1581_v21 = vor.u32 %v1986_v19, %v1580_v18  ;;  %v2013_v27 = vld [vmem:[#allocation8 + $0x1b8] sm:$0xf0]  ;;  %v1832_v28 = vld [vmem:[#allocation8 + $0x2d0] sm:$0xf]  ;;  %v114_v40 = vperm.slane %v2316_v5, 2 }
  0x2c   :  { %1044 = vmatpush.bf16.msrb.mxu2 %v1725_v56  ;;  %1055 = vmatpush.bf16.msra.mxu3 %v1845_v17  ;;  %v2049_v29 = vld [vmem:[#allocation8 + $0x2d8] sm:$0xf0]  ;;  %v1689_v31 = vor.u32 %v2013_v27, %v1688_v24  ;;  %v1568_v33 = vld [vmem:[#allocation8 + $0xc0] sm:$0xf]  ;;  %v1983_v34 = vld [vmem:[#allocation8 + $0xc8] sm:$0xf0] }
  0x2d   :  { %1019 = vmatpush.bf16.msra.mxu0 %v1521_v0  ;;  %v1833_v32 = vor.u32 %v2049_v29, %v1832_v28  ;;  %v1569_v36 = vor.u32 %v1983_v34, %v1568_v33  ;;  %v2003_v37 = vld [vmem:[#allocation8 + $0x16c] sm:$0xf]  ;;  %v1654_v38 = vld [vmem:[#allocation8 + $0x174] sm:$0xf0]  ;;  %v1962_v43 = vld [vmem:[#allocation8 + $0x20] sm:$0xf0]  ;;  %v243_v44 = vmul.f32 %v2314_v60, %v242_v20 }
  0x2e   :  { %v1657_v41 = vor.u32 %v2003_v37, %v1654_v38  ;;  %v1484_v42 = vld [vmem:[#allocation8 + $0x18] sm:$0xf]  ;;  %v2010_v47 = vld [vmem:[#allocation8 + $0x1a0] sm:$0xf0]  ;;  %v2000_v56 = vld [vmem:[#allocation8 + $0x154] sm:$0xf] }
  0x2f   :  { %1032 = vmatpush.bf16.msrb.mxu1 %v1617_v50  ;;  %v1485_v45 = vor.u32 %v1962_v43, %v1484_v42  ;;  %v1676_v46 = vld [vmem:[#allocation8 + $0x198] sm:$0xf]  ;;  %v2046_v52 = vld [vmem:[#allocation8 + $0x2c0] sm:$0xf0]  ;;  %v1642_v57 = vld [vmem:[#allocation8 + $0x15c] sm:$0xf0]  ;;  %v244_v0 = vadd.f32 %v2314_v60, %v243_v44 }
  0x30   :  { %1045 = vmatpush.bf16.msrb.mxu2 %v1713_v2  ;;  %1056 = vmatpush.bf16.msra.mxu3 %v1833_v32  ;;  %v1820_v48 = vld [vmem:[#allocation8 + $0x2b8] sm:$0xf]  ;;  %v1677_v51 = vor.u32 %v2010_v47, %v1676_v46  ;;  %v1645_v61 = vor.u32 %v2000_v56, %v1642_v57  ;;  %v1472_v62 = vld [vmem:[#allocation8] sm:$0xf]  ;;  %v1959_v63 = vld [vmem:[#allocation8 + $0x8] sm:$0xf0] }
  0x31   :  { %1469 = vmatmul.msk.bf16.vlgmr.msrb.gmra.mxu3 %vm160_vm0, %v102_v22  ;;  %1020 = vmatpush.bf16.msra.mxu0 %v1509_v11  ;;  %v1496_v22 = vld [vmem:[#allocation8 + $0x30] sm:$0xf]  ;;  %v1821_v55 = vor.u32 %v2046_v52, %v1820_v48  ;;  %v1473_v3 = vor.u32 %v1959_v63, %v1472_v62  ;;  %v1664_v4 = vld [vmem:[#allocation8 + $0x180] sm:$0xf]  ;;  %v2007_v6 = vld [vmem:[#allocation8 + $0x188] sm:$0xf0] }
  0x32   :  { %v1497_v26 = vor.u32 %v1965_v23, %v1496_v22  ;;  %v1665_v9 = vor.u32 %v2007_v6, %v1664_v4  ;;  %v1808_v10 = vld [vmem:[#allocation8 + $0x2a0] sm:$0xf]  ;;  %v2043_v11 = vld [vmem:[#allocation8 + $0x2a8] sm:$0xf0]  ;;  %v1750_v20 = vld [vmem:[#allocation8 + $0x234] sm:$0xf0]  ;;  %v2340_v22 = vsel %vm245_vm1, %v2314_v60, %v244_v0 }
  0x33   :  { %1033 = vmatpush.bf16.msrb.mxu1 %v1605_v59  ;;  %v1809_v13 = vor.u32 %v2043_v11, %v1808_v10  ;;  %v1979_v14 = vld [vmem:[#allocation8 + $0xac] sm:$0xf]  ;;  %v2040_v32 = vld [vmem:[#allocation8 + $0x290] sm:$0xf0]  ;;  %v1546_v37 = vld [vmem:[#allocation8 + $0x9c] sm:$0xf0] }
  0x34   :  { %1046 = vmatpush.bf16.msrb.mxu2 %v1701_v16  ;;  %1057 = vmatpush.bf16.msra.mxu3 %v1821_v55  ;;  %v2027_v16 = vld [vmem:[#allocation8 + $0x22c] sm:$0xf]  ;;  %v1976_v33 = vld [vmem:[#allocation8 + $0x94] sm:$0xf]  ;;  %v1738_v60 = vld [vmem:[#allocation8 + $0x21c] sm:$0xf0] }
  0x35   :  { %1021 = vmatpush.bf16.msra.mxu0 %v1497_v26  ;;  %v1753_v24 = vor.u32 %v2027_v16, %v1750_v20  ;;  %v1796_v26 = vld [vmem:[#allocation8 + $0x288] sm:$0xf]  ;;  %v2024_v38 = vld [vmem:[#allocation8 + $0x214] sm:$0xf]  ;;  %v1994_v43 = vld [vmem:[#allocation8 + $0x124] sm:$0xf] }
  0x36   :  { %v1741_v42 = vor.u32 %v2024_v38, %v1738_v60  ;;  %v1618_v44 = vld [vmem:[#allocation8 + $0x12c] sm:$0xf0]  ;;  %v2037_v48 = vld [vmem:[#allocation8 + $0x278] sm:$0xf0]  ;;  %v115_v52 = vperm.slane %v2316_v5, 3  ;;  %s1422_s23 = sshll.u32 %s2434_s5, 4  ;;  %s1423_s23 = int_to_ptr.hbm [resolvable:$true] %s1422_s23 }
  0x37   :  { %1034 = vmatpush.bf16.msrb.mxu1 %v1593_v7  ;;  %v1621_v47 = vor.u32 %v1994_v43, %v1618_v44  ;;  %v1534_v55 = vld [vmem:[#allocation8 + $0x84] sm:$0xf0]  ;;  %v2021_v56 = vld [vmem:[#allocation8 + $0x1fc] sm:$0xf]  ;;  %v1991_v62 = vld [vmem:[#allocation8 + $0x10c] sm:$0xf] }
  0x38   :  { %1047 = vmatpush.bf16.msrb.mxu2 %v1689_v31  ;;  %1058 = vmatpush.bf16.msra.mxu3 %v1809_v13  ;;  %v1606_v63 = vld [vmem:[#allocation8 + $0x114] sm:$0xf0]  ;;  %v2034_v4 = vld [vmem:[#allocation8 + $0x260] sm:$0xf0]  ;;  %v2051_v38 = vld [vmem:[#allocation8 + $0x2ec] sm:$0xf] }
  0x39   :  { %1022 = vmatpush.bf16.msra.mxu0 %v1485_v45  ;;  %v1784_v45 = vld [vmem:[#allocation8 + $0x270] sm:$0xf]  ;;  %v1846_v60 = vld [vmem:[#allocation8 + $0x2f4] sm:$0xf0]  ;;  %v1582_v43 = vld [vmem:[#allocation8 + $0xe4] sm:$0xf0] }
  0x3b   :  { %1035 = vmatpush.bf16.msrb.mxu1 %v1581_v21  ;;  %v1997_v21 = vld [vmem:[#allocation8 + $0x13c] sm:$0xf] }
  0x3c   :  { %1048 = vmatpush.bf16.msrb.mxu2 %v1677_v51 }
  0x3d   :  { %1023 = vmatpush.bf16.msra.mxu0 %v1473_v3  ;;  %v1772_v3 = vld [vmem:[#allocation8 + $0x258] sm:$0xf] }
  0x3e   :  { %v1773_v6 = vor.u32 %v2034_v4, %v1772_v3 }
  0x3f   :  { %1036 = vmatpush.bf16.msrb.mxu1 %v1569_v36  ;;  %v1797_v36 = vor.u32 %v2040_v32, %v1796_v26 }
  0x40   :  { %1049 = vmatpush.bf16.msrb.mxu2 %v1665_v9  ;;  %v2018_v9 = vld [vmem:[#allocation8 + $0x1e4] sm:$0xf] }
  0x41   :  { %1059 = vmatpush.bf16.msra.mxu3 %v1797_v36 }
  0x43   :  { %1081 = vmatpush.bf16.msra.mxu1 %v1657_v41  ;;  %v1549_v41 = vor.u32 %v1976_v33, %v1546_v37  ;;  %v2015_v33 = vld [vmem:[#allocation8 + $0x1cc] sm:$0xf] }
  0x44   :  { %1094 = vmatpush.bf16.msra.mxu2 %v1753_v24  ;;  %v1760_v24 = vld [vmem:[#allocation8 + $0x240] sm:$0xf] }
  0x47   :  { %1082 = vmatpush.bf16.msra.mxu1 %v1645_v61  ;;  %v1726_v61 = vld [vmem:[#allocation8 + $0x204] sm:$0xf0] }
  0x48   :  { %1095 = vmatpush.bf16.msra.mxu2 %v1741_v42  ;;  %v1985_v42 = vld [vmem:[#allocation8 + $0xdc] sm:$0xf] }
  0x9f   :  { %v186_v25 = vpop.f32.mrf.mxu1 }
  0xa0   :  { %v2320_v30 = vadd.f32 %v186_v25, %v113_v15  ;;  %v1558_v15 = vld [vmem:[#allocation8 + $0xb4] sm:$0xf0]  ;;  %v1630_v25 = vld [vmem:[#allocation8 + $0x144] sm:$0xf0] }
  0xa1   :  { %v1561_v19 = vor.u32 %v1979_v14, %v1558_v15  ;;  %v1633_v31 = vor.u32 %v1997_v21, %v1630_v25  ;;  %v1714_v14 = vld [vmem:[#allocation8 + $0x1ec] sm:$0xf0]  ;;  %v2031_v25 = vld [vmem:[#allocation8 + $0x248] sm:$0xf0] }
  0xa2   :  { %v222_v39 = vrot.slane %v2320_v30, 4 }
  0xa3   :  { %1068 = vmatpush.bf16.msrb.mxu0 %v1561_v19  ;;  %1083 = vmatpush.bf16.msra.mxu1 %v1633_v31  ;;  %v1594_v19 = vld [vmem:[#allocation8 + $0xfc] sm:$0xf0] }
  0xa4   :  { %v223_v49 = vadd.f32 %v222_v39, %v2320_v30  ;;  %v173_v50 = vpop.f32.mrf.mxu3 }
  0xa5   :  { %v2327_v53 = vadd.f32 %v173_v50, %v112_v35 }
  0xa6   :  { %v199_v54 = vpop.f32.mrf.mxu2  ;;  %v224_v58 = vrot.slane %v223_v49, 2 }
  0xa7   :  { %v2329_v59 = vadd.f32 %v199_v54, %v114_v40  ;;  %v216_v1 = vrot.slane %v2327_v53, 4  ;;  %v188_v2 = vpop.f32.mrf.mxu1  ;;  %1069 = vmatpush.bf16.msrb.mxu0 %v1549_v41  ;;  %v1785_v54 = vor.u32 %v2037_v48, %v1784_v45  ;;  %1084 = vmatpush.bf16.msra.mxu1 %v1621_v47  ;;  %v1849_v41 = vor.u32 %v2051_v38, %v1846_v60  ;;  %v1964_v47 = vld [vmem:[#allocation8 + $0x34] sm:$0xf]  ;;  %v1498_v48 = vld [vmem:[#allocation8 + $0x3c] sm:$0xf0] }
  0xa8   :  { %v225_v7 = vadd.f32 %v224_v58, %v223_v49  ;;  %v1973_v49 = vld [vmem:[#allocation8 + $0x7c] sm:$0xf]  ;;  %v1609_v2 = vor.u32 %v1991_v62, %v1606_v63  ;;  %v2048_v62 = vld [vmem:[#allocation8 + $0x2d4] sm:$0xf]  ;;  %v1834_v63 = vld [vmem:[#allocation8 + $0x2dc] sm:$0xf0] }
  0xa9   :  { %v228_v8 = vrot.slane %v2329_v59, 4  ;;  %v217_v12 = vadd.f32 %v216_v1, %v2327_v53  ;;  %v1537_v58 = vor.u32 %v1973_v49, %v1534_v55  ;;  %1060 = vmatpush.bf16.msra.mxu3 %v1785_v54  ;;  %v1501_v54 = vor.u32 %v1964_v47, %v1498_v48  ;;  %v2012_v55 = vld [vmem:[#allocation8 + $0x1b4] sm:$0xf]  ;;  %v1810_v38 = vld [vmem:[#allocation8 + $0x2ac] sm:$0xf0] }
  0xaa   :  { %v226_v17 = vrot.slane %v225_v7, 1  ;;  %v2036_v48 = vld [vmem:[#allocation8 + $0x274] sm:$0xf] }
  0xab   :  { %v229_v18 = vadd.f32 %v228_v8, %v2329_v59  ;;  %v218_v23 = vrot.slane %v217_v12, 2  ;;  %v1522_v8 = vld [vmem:[#allocation8 + $0x6c] sm:$0xf0]  ;;  %1070 = vmatpush.bf16.msrb.mxu0 %v1537_v58  ;;  %1085 = vmatpush.bf16.msra.mxu1 %v1609_v2  ;;  %v1982_v2 = vld [vmem:[#allocation8 + $0xc4] sm:$0xf] }
  0xac   :  { %v227_v27 = vadd.f32 %v226_v17, %v225_v7  ;;  %v175_v29 = vpop.f32.mrf.mxu3  ;;  %v1970_v7 = vld [vmem:[#allocation8 + $0x64] sm:$0xf]  ;;  %v1717_v17 = vor.u32 %v2018_v9, %v1714_v14  ;;  %v1961_v9 = vld [vmem:[#allocation8 + $0x1c] sm:$0xf] }
  0xad   :  { %v230_v28 = vrot.slane %v229_v18, 2  ;;  %v219_v34 = vadd.f32 %v218_v23, %v217_v12  ;;  %v1525_v13 = vor.u32 %v1970_v7, %v1522_v8  ;;  %1061 = vmatpush.bf16.msra.mxu3 %v1773_v6  ;;  %v1510_v29 = vld [vmem:[#allocation8 + $0x54] sm:$0xf0]  ;;  %v2009_v14 = vld [vmem:[#allocation8 + $0x19c] sm:$0xf] }
  0xae   :  { %v201_v35 = vpop.f32.mrf.mxu2  ;;  %v248_v39 = vmul.f32 %v2340_v22, %v227_v27  ;;  %v1761_v27 = vor.u32 %v2031_v25, %v1760_v24 }
  0xaf   :  { %v231_v40 = vadd.f32 %v230_v28, %v229_v18  ;;  %v220_v46 = vrot.slane %v219_v34, 1  ;;  %v1988_v18 = vld [vmem:[#allocation8 + $0xf4] sm:$0xf]  ;;  %v1967_v28 = vld [vmem:[#allocation8 + $0x4c] sm:$0xf]  ;;  %1071 = vmatpush.bf16.msrb.mxu0 %v1525_v13 }
  0xb0   :  { %v2344_v50 = vsub.f32 %v2320_v30, %v248_v39  ;;  %v1729_v30 = vor.u32 %v2021_v56, %v1726_v61  ;;  %v1597_v23 = vor.u32 %v1988_v18, %v1594_v19  ;;  %v1690_v56 = vld [vmem:[#allocation8 + $0x1bc] sm:$0xf0] }
  0xb1   :  { %v232_v51 = vrot.slane %v231_v40, 1  ;;  %v221_v57 = vadd.f32 %v220_v46, %v219_v34  ;;  %v1702_v34 = vld [vmem:[#allocation8 + $0x1d4] sm:$0xf0]  ;;  %1062 = vmatpush.bf16.msra.mxu3 %v1761_v27  ;;  %v1585_v46 = vor.u32 %v1985_v42, %v1582_v43  ;;  %v1693_v61 = vor.u32 %v2012_v55, %v1690_v56  ;;  %v2039_v42 = vld [vmem:[#allocation8 + $0x28c] sm:$0xf] }
  0xb2   :  { %v256_v0 = vmul.f32 %v2344_v50, %v2344_v50  ;;  %1096 = vmatpush.bf16.msra.mxu2 %v1729_v30  ;;  %v1705_v37 = vor.u32 %v2015_v33, %v1702_v34  ;;  %1086 = vmatpush.bf16.msra.mxu1 %v1597_v23  ;;  %v1837_v30 = vor.u32 %v2048_v62, %v1834_v63  ;;  %v2045_v23 = vld [vmem:[#allocation8 + $0x2bc] sm:$0xf]  ;;  %v1666_v33 = vld [vmem:[#allocation8 + $0x18c] sm:$0xf0]  ;;  %v2042_v34 = vld [vmem:[#allocation8 + $0x2a4] sm:$0xf] }
  0xb3   :  { %v233_v1 = vadd.f32 %v232_v51, %v231_v40  ;;  %v247_v5 = vmul.f32 %v2340_v22, %v221_v57  ;;  %v1798_v43 = vld [vmem:[#allocation8 + $0x294] sm:$0xf0]  ;;  %v2033_v62 = vld [vmem:[#allocation8 + $0x25c] sm:$0xf]  ;;  %v1774_v63 = vld [vmem:[#allocation8 + $0x264] sm:$0xf0] }
  0xb4   :  { %v265_v10 = vrot.slane %v256_v0, 4  ;;  %v212_v12 = vpop.f32.mrf.mxu3 }
  0xb5   :  { %v249_v11 = vmul.f32 %v2340_v22, %v233_v1  ;;  %v2352_v15 = vsub.f32 %v2327_v53, %v247_v5  ;;  %v2354_v16 = vadd.f32 %v212_v12, %v115_v52  ;;  %1107 = vmatpush.bf16.msrb.mxu3 %v1849_v41  ;;  %v1570_v5 = vld [vmem:[#allocation8 + $0xcc] sm:$0xf0] }
  0xb6   :  { %v266_v20 = vadd.f32 %v265_v10, %v256_v0  ;;  %1097 = vmatpush.bf16.msra.mxu2 %v1717_v17  ;;  %1087 = vmatpush.bf16.msra.mxu1 %v1585_v46  ;;  %v1573_v8 = vor.u32 %v1982_v2, %v1570_v5  ;;  %v1486_v10 = vld [vmem:[#allocation8 + $0x24] sm:$0xf0]  ;;  %v1777_v5 = vor.u32 %v2033_v62, %v1774_v63  ;;  %v1552_v62 = vld [vmem:[#allocation8 + $0x98] sm:$0xf]  ;;  %v1978_v63 = vld [vmem:[#allocation8 + $0xa0] sm:$0xf0] }
  0xb7   :  { %v2357_v21 = vsub.f32 %v2329_v59, %v249_v11  ;;  %v255_v26 = vmul.f32 %v2352_v15, %v2352_v15  ;;  %v234_v53 = vrot.slane %v2354_v16, 4  ;;  %v1513_v59 = vor.u32 %v1967_v28, %v1510_v29  ;;  %v1678_v17 = vld [vmem:[#allocation8 + $0x1a4] sm:$0xf0]  ;;  %v1958_v28 = vld [vmem:[#allocation8 + $0x4] sm:$0xf] }
  0xb8   :  { %v267_v31 = vrot.slane %v266_v20, 2  ;;  %v1489_v13 = vor.u32 %v1961_v9, %v1486_v10  ;;  %v1474_v29 = vld [vmem:[#allocation8 + $0xc] sm:$0xf0]  ;;  %v2030_v9 = vld [vmem:[#allocation8 + $0x244] sm:$0xf] }
  0xb9   :  { %v257_v32 = vmul.f32 %v2357_v21, %v2357_v21  ;;  %v259_v35 = vrot.slane %v255_v26, 4  ;;  %v235_v36 = vadd.f32 %v234_v53, %v2354_v16  ;;  %1072 = vmatpush.bf16.msrb.mxu0 %v1513_v59  ;;  %1108 = vmatpush.bf16.msrb.mxu3 %v1837_v30  ;;  %v2382_v30 = vld [vmem:[#allocation7 + $0x4] sm:$0xf]  ;;  %v1762_v10 = vld [vmem:[#allocation8 + $0x24c] sm:$0xf0] }
  0xba   :  { %v268_v39 = vadd.f32 %v267_v31, %v266_v20  ;;  %1098 = vmatpush.bf16.msra.mxu2 %v1705_v37  ;;  %1088 = vmatpush.bf16.msra.mxu1 %v1573_v8  ;;  %v1681_v20 = vor.u32 %v2009_v14, %v1678_v17  ;;  %v2006_v31 = vld [vmem:[#allocation8 + $0x184] sm:$0xf] }
  0xbb   :  { %v271_v40 = vrot.slane %v257_v32, 4  ;;  %v260_v44 = vadd.f32 %v259_v35, %v255_v26  ;;  %v236_v45 = vrot.slane %v235_v36, 2  ;;  %v1822_v26 = vld [vmem:[#allocation8 + $0x2c4] sm:$0xf0]  ;;  %v1669_v37 = vor.u32 %v2006_v31, %v1666_v33  ;;  %v2005_v31 = vld [vmem:[#allocation8 + $0x178] sm:$0xf0] }
  0xbc   :  { %v269_v49 = vrot.slane %v268_v39, 1  ;;  %v214_v52 = vpop.f32.mrf.mxu3  ;;  %v1825_v27 = vor.u32 %v2045_v23, %v1822_v26 }
  0xbd   :  { %v272_v51 = vadd.f32 %v271_v40, %v257_v32  ;;  %v261_v57 = vrot.slane %v260_v44, 2  ;;  %v237_v58 = vadd.f32 %v236_v45, %v235_v36  ;;  %1073 = vmatpush.bf16.msrb.mxu0 %v1501_v54  ;;  %v1477_v36 = vor.u32 %v1958_v28, %v1474_v29  ;;  %v1786_v52 = vld [vmem:[#allocation8 + $0x27c] sm:$0xf0]  ;;  %v1660_v29 = vld [vmem:[#allocation8 + $0x170] sm:$0xf] }
  0xbe   :  { %v270_v0 = vadd.f32 %v269_v49, %v268_v39  ;;  %1099 = vmatpush.bf16.msra.mxu2 %v1693_v61  ;;  %1109 = vmatpush.bf16.msrb.mxu3 %v1825_v27  ;;  %v1813_v40 = vor.u32 %v2042_v34, %v1810_v38  ;;  %v1801_v45 = vor.u32 %v2039_v42, %v1798_v43 }
  0xbf   :  { %v273_v1 = vrot.slane %v272_v51, 2  ;;  %v262_v3 = vadd.f32 %v261_v57, %v260_v44  ;;  %v238_v4 = vrot.slane %v237_v58, 1  ;;  %v1789_v54 = vor.u32 %v2036_v48, %v1786_v52  ;;  %v2029_v48 = vld [vmem:[#allocation8 + $0x238] sm:$0xf0] }
  0xc0   :  { %v284_v6 = vmul.f32 %v270_v0, %v2340_v22 }
  0xc1   :  { %v274_v7 = vadd.f32 %v273_v1, %v272_v51  ;;  %v263_v11 = vrot.slane %v262_v3, 1  ;;  %v239_v12 = vadd.f32 %v238_v4, %v237_v58  ;;  %1074 = vmatpush.bf16.msrb.mxu0 %v1489_v13  ;;  %v2384_v4 = vld [vmem:[#allocation7 + $0x8] sm:$0xf] }
  0xc2   :  { %v2366_v18 = vadd.f32 1e-05, %v284_v6  ;;  %1100 = vmatpush.bf16.msra.mxu2 %v1681_v20  ;;  %1110 = vmatpush.bf16.msrb.mxu3 %v1813_v40  ;;  %v351_v38 = vperm.slane %v2384_v4, 2 }
  0xc3   :  { %v275_v19 = vrot.slane %v274_v7, 1  ;;  %v264_v24 = vadd.f32 %v263_v11, %v262_v3  ;;  %v250_v25 = vmul.f32 %v2340_v22, %v239_v12  ;;  %v337_v12 = vperm.slane %v2382_v30, 1 }
  0xc4   :  { %2094 = vrsqrt.f32 %v2366_v18  ;;  %vm307_vm3 = vweird.f32 %v2366_v18 }
  0xc5   :  { %v276_v53 = vadd.f32 %v275_v19, %v274_v7  ;;  %v283_v32 = vmul.f32 %v264_v24, %v2340_v22  ;;  %v2372_v59 = vsub.f32 %v2354_v16, %v250_v25  ;;  %1075 = vmatpush.bf16.msrb.mxu0 %v1477_v36  ;;  %v350_v19 = vperm.slane %v2384_v4, 1 }
  0xc6   :  { %1101 = vmatpush.bf16.msra.mxu2 %v1669_v37  ;;  %1111 = vmatpush.bf16.msrb.mxu3 %v1801_v45  ;;  %v1564_v45 = vld [vmem:[#allocation8 + $0xb0] sm:$0xf] }
  0xc7   :  { %v285_v35 = vmul.f32 %v276_v53, %v2340_v22  ;;  %v287_v60 = vadd.f32 1e-05, %v283_v32  ;;  %v258_v39 = vmul.f32 %v2372_v59, %v2372_v59  ;;  %v338_v32 = vperm.slane %v2382_v30, 2 }
  0xc9   :  { %v2377_v41 = vadd.f32 1e-05, %v285_v35  ;;  %2096 = vrsqrt.f32 %v287_v60  ;;  %v277_v16 = vrot.slane %v258_v39, 4  ;;  %vm297_vm7 = vweird.f32 %v287_v60 }
  0xca   :  { %v2095_v44 = vpop.eup %2094  ;;  %1112 = vmatpush.bf16.msrb.mxu3 %v1789_v54  ;;  %v349_v35 = vperm.slane %v2384_v4, 0 }
  0xcb   :  { %2098 = vrsqrt.f32 %v2377_v41  ;;  %v302_v46 = vmul.f32 %v2095_v44, %v2366_v18  ;;  %v278_v47 = vadd.f32 %v277_v16, %v258_v39  ;;  %vm308_vm2 = vweird.f32 %v2095_v44  ;;  %v2002_v16 = vld [vmem:[#allocation8 + $0x160] sm:$0xf0] }
  0xcc   :  { %vm309_vm4 = vmor %vm307_vm3, %vm308_vm2  ;;  %v1765_v18 = vor.u32 %v2030_v9, %v1762_v10  ;;  %vm317_vm9 = vweird.f32 %v2377_v41  ;;  %v1996_v9 = vld [vmem:[#allocation8 + $0x130] sm:$0xf0] }
  0xcd   :  { %v303_v49 = vmul.f32 %v2095_v44, %v302_v46  ;;  %v279_v51 = vrot.slane %v278_v47, 2  ;;  %v1981_v46 = vld [vmem:[#allocation8 + $0xb8] sm:$0xf0] }
  0xce   :  { %1113 = vmatpush.bf16.msrb.mxu3 %v1777_v5 }
  0xcf   :  { %v2097_v55 = vpop.eup %2096  ;;  %v304_v56 = vmul.f32 0.5, %v303_v49  ;;  %v280_v57 = vadd.f32 %v279_v51, %v278_v47 }
  0xd0   :  { %v292_v61 = vmul.f32 %v2097_v55, %v287_v60  ;;  %vm298_vm5 = vweird.f32 %v2097_v55  ;;  %v1661_v60 = vor.u32 %v2005_v31, %v1660_v29  ;;  %v2020_v29 = vld [vmem:[#allocation8 + $0x1f0] sm:$0xf0] }
  0xd1   :  { %v2099_v58 = vpop.eup %2098  ;;  %v305_v0 = vsub.f32 1.5, %v304_v56  ;;  %v281_v2 = vrot.slane %v280_v57, 1  ;;  %vm299_vm8 = vmor %vm297_vm7, %vm298_vm5  ;;  %v1636_v56 = vld [vmem:[#allocation8 + $0x140] sm:$0xf] }
  0xd2   :  { %v312_v1 = vmul.f32 %v2099_v58, %v2377_v41  ;;  %v293_v3 = vmul.f32 %v2097_v55, %v292_v61  ;;  %vm318_vm6 = vweird.f32 %v2099_v58  ;;  %1114 = vmatpush.bf16.msrb.mxu3 %v1765_v18  ;;  %v1648_v41 = vld [vmem:[#allocation8 + $0x158] sm:$0xf] }
  0xd3   :  { %v306_v6 = vmul.f32 %v2095_v44, %v305_v0  ;;  %v282_v8 = vadd.f32 %v281_v2, %v280_v57  ;;  %vm319_vm10 = vmor %vm317_vm9, %vm318_vm6  ;;  %v1649_v49 = vor.u32 %v2002_v16, %v1648_v41  ;;  %v1999_v57 = vld [vmem:[#allocation8 + $0x148] sm:$0xf0]  ;;  %v1744_v2 = vld [vmem:[#allocation8 + $0x218] sm:$0xf] }
  0xd4   :  { %v313_v7 = vmul.f32 %v2099_v58, %v312_v1  ;;  %v294_v11 = vmul.f32 0.5, %v293_v3  ;;  %v2026_v3 = vld [vmem:[#allocation8 + $0x220] sm:$0xf0]  ;;  %v1637_v5 = vor.u32 %v1999_v57, %v1636_v56  ;;  %v1852_v41 = vld [vmem:[#allocation8 + $0x2f0] sm:$0xf] }
  0xd5   :  { %v310_v13 = vsel %vm309_vm4, %v2095_v44, %v306_v6  ;;  %v286_v17 = vmul.f32 %v282_v8, %v2340_v22  ;;  %v336_v22 = vperm.slane %v2382_v30, 0  ;;  %v1624_v8 = vld [vmem:[#allocation8 + $0x128] sm:$0xf]  ;;  %v1745_v10 = vor.u32 %v2026_v3, %v1744_v2  ;;  %v2053_v16 = vld [vmem:[#allocation8 + $0x2f8] sm:$0xf0] }
  0xd6   :  { %v314_v14 = vmul.f32 0.5, %v313_v7  ;;  %v332_v20 = vmul.f32 %v310_v13, %v2344_v50  ;;  %v295_v23 = vsub.f32 1.5, %v294_v11  ;;  %v1553_v7 = vor.u32 %v1978_v63, %v1552_v62  ;;  %v1540_v11 = vld [vmem:[#allocation8 + $0x80] sm:$0xf]  ;;  %v1984_v56 = vld [vmem:[#allocation8 + $0xd0] sm:$0xf0] }
  0xd7   :  { %v2391_v25 = vadd.f32 1e-05, %v286_v17  ;;  %v2023_v17 = vld [vmem:[#allocation8 + $0x208] sm:$0xf0]  ;;  %v1492_v62 = vld [vmem:[#allocation8 + $0x20] sm:$0xf] }
  0xd8   :  { %v315_v24 = vsub.f32 1.5, %v314_v14  ;;  %v296_v26 = vmul.f32 %v2097_v55, %v295_v23  ;;  %v345_v53 = vmul.f32 %v337_v12, %v332_v20  ;;  %v1975_v12 = vld [vmem:[#allocation8 + $0x88] sm:$0xf0]  ;;  %v1732_v14 = vld [vmem:[#allocation8 + $0x200] sm:$0xf]  ;;  %v1625_v20 = vor.u32 %v1996_v9, %v1624_v8 }
  0xd9   :  { %2100 = vrsqrt.f32 %v2391_v25  ;;  %vm327_vm12 = vweird.f32 %v2391_v25  ;;  %v1541_v18 = vor.u32 %v1975_v12, %v1540_v11  ;;  %v1684_v2 = vld [vmem:[#allocation8 + $0x1a0] sm:$0xf]  ;;  %v2011_v3 = vld [vmem:[#allocation8 + $0x1a8] sm:$0xf0]  ;;  %v1960_v12 = vld [vmem:[#allocation8 + $0x10] sm:$0xf0] }
  0xda   :  { %v316_v27 = vmul.f32 %v2099_v58, %v315_v24  ;;  %v300_v50 = vsel %vm299_vm8, %v2097_v55, %v296_v26  ;;  %v358_v28 = vadd.f32 %v350_v19, %v345_v53  ;;  %v1565_v55 = vor.u32 %v1981_v46, %v1564_v45  ;;  %v1612_v24 = vld [vmem:[#allocation8 + $0x110] sm:$0xf]  ;;  %v1993_v26 = vld [vmem:[#allocation8 + $0x118] sm:$0xf0] }
  0xdb   :  { %v331_v33 = vmul.f32 %v300_v50, %v2352_v15  ;;  %v339_v19 = vperm.slane %v2382_v30, 3  ;;  %v1972_v50 = vld [vmem:[#allocation8 + $0x70] sm:$0xf0]  ;;  %v1613_v30 = vor.u32 %v1993_v26, %v1612_v24  ;;  %v1685_v9 = vor.u32 %v2011_v3, %v1684_v2  ;;  %v1804_v24 = vld [vmem:[#allocation8 + $0x290] sm:$0xf] }
  0xdc   :  { %v320_v34 = vsel %vm319_vm10, %v2099_v58, %v316_v27  ;;  %v362_v37 = vmax.f32 %v358_v28, 0.0  ;;  %v1733_v27 = vor.u32 %v2023_v17, %v1732_v14  ;;  %v1720_v28 = vld [vmem:[#allocation8 + $0x1e8] sm:$0xf]  ;;  %v2008_v14 = vld [vmem:[#allocation8 + $0x190] sm:$0xf0] }
  0xdd   :  { %v333_v36 = vmul.f32 %v320_v34, %v2357_v21  ;;  %v344_v39 = vmul.f32 %v336_v22, %v331_v33  ;;  %v1756_v21 = vld [vmem:[#allocation8 + $0x230] sm:$0xf]  ;;  %v1528_v22 = vld [vmem:[#allocation8 + $0x68] sm:$0xf]  ;;  %v1600_v33 = vld [vmem:[#allocation8 + $0xf8] sm:$0xf] }
  0xde   :  { %v2401_v40 = vpack.c.bf16 %v362_v37, %v362_v37  ;;  %v1757_v61 = vor.u32 %v2029_v48, %v1756_v21  ;;  %v1990_v34 = vld [vmem:[#allocation8 + $0x100] sm:$0xf0]  ;;  %v1516_v37 = vld [vmem:[#allocation8 + $0x50] sm:$0xf]  ;;  %v1696_v48 = vld [vmem:[#allocation8 + $0x1b8] sm:$0xf] }
  0xdf   :  { %v346_v42 = vmul.f32 %v338_v32, %v333_v36  ;;  %v2101_v43 = vpop.eup %2100  ;;  %v357_v44 = vadd.f32 %v349_v35, %v344_v39  ;;  %v1529_v32 = vor.u32 %v1972_v50, %v1528_v22  ;;  %v1721_v35 = vor.u32 %v2020_v29, %v1720_v28  ;;  %v1966_v21 = vld [vmem:[#allocation8 + $0x40] sm:$0xf0]  ;;  %v1816_v17 = vld [vmem:[#allocation8 + $0x2a8] sm:$0xf]  ;;  %v2041_v26 = vld [vmem:[#allocation8 + $0x298] sm:$0xf0] }
  0xe0   :  { %v322_v15 = vmul.f32 %v2101_v43, %v2391_v25  ;;  %1037 = vmatmul.bf16.vlgmr.msrb.gmra.mxu1 %v2401_v40  ;;  %vm328_vm11 = vweird.f32 %v2101_v43  ;;  %v352_v25 = vperm.slane %v2384_v4, 3  ;;  %v1601_v4 = vor.u32 %v1990_v34, %v1600_v33  ;;  %v2038_v22 = vld [vmem:[#allocation8 + $0x280] sm:$0xf0]  ;;  %v2035_v28 = vld [vmem:[#allocation8 + $0x268] sm:$0xf0]  ;;  %v2060_v33 = vld [vmem:[#allocation10 + $0x30] sm:$0xff] }
  0xe1   :  { %v359_v47 = vadd.f32 %v351_v38, %v346_v42  ;;  %1133 = vmatpush.bf16.msrb.mxu1 %v1661_v60  ;;  %v361_v51 = vmax.f32 %v357_v44, 0.0  ;;  %vm329_vm13 = vmor %vm327_vm12, %vm328_vm11  ;;  %v1708_v38 = vld [vmem:[#allocation8 + $0x1d0] sm:$0xf]  ;;  %v2017_v60 = vld [vmem:[#allocation8 + $0x1d8] sm:$0xf0] }
  0xe2   :  { %v323_v52 = vmul.f32 %v2101_v43, %v322_v15  ;;  %v1588_v42 = vld [vmem:[#allocation8 + $0xe0] sm:$0xf]  ;;  %v1709_v46 = vor.u32 %v2017_v60, %v1708_v38  ;;  %v1504_v15 = vld [vmem:[#allocation8 + $0x38] sm:$0xf]  ;;  %v1768_v29 = vld [vmem:[#allocation8 + $0x248] sm:$0xf] }
  0xe3   :  { %v363_v54 = vmax.f32 %v359_v47, 0.0  ;;  %v2405_v58 = vpack.c.bf16 %v361_v51, %v361_v51  ;;  %v1853_v47 = vor.u32 %v2053_v16, %v1852_v41  ;;  %v1505_v57 = vor.u32 %v1966_v21, %v1504_v15  ;;  %v2057_v34 = vld [vmem:[#allocation10 + $0x18] sm:$0xff]  ;;  %v2067_v38 = vld [vmem:[#allocation10 + $0x68] sm:$0xff]  ;;  %v2054_v60 = vld [vmem:[#allocation10] sm:$0xff] }
  0xe4   :  { %v324_v0 = vmul.f32 0.5, %v323_v52  ;;  %v1840_v52 = vld [vmem:[#allocation8 + $0x2d8] sm:$0xf]  ;;  %v2075_v15 = vld [vmem:[#allocation10 + $0xa8] sm:$0xff]  ;;  %v99_v21 = vld [vmem:[#allocation7 + $0xc] sm:$0x7] }
  0xe5   :  { %v2407_v1 = vpack.c.bf16 %v363_v54, %v363_v54  ;;  %1134 = vmatpush.bf16.msrb.mxu1 %v1649_v49  ;;  %1024 = vmatmul.bf16.vlgmr.msra.gmra.mxu0 %v2405_v58  ;;  %v2014_v49 = vld [vmem:[#allocation8 + $0x1c0] sm:$0xf0]  ;;  %v2065_v41 = vld [vmem:[#allocation10 + $0x58] sm:$0xff] }
  0xe6   :  { %v325_v6 = vsub.f32 1.5, %v324_v0  ;;  %1120 = vmatpush.bf16.msra.mxu0 %v1565_v55  ;;  %v2050_v54 = vld [vmem:[#allocation8 + $0x2e0] sm:$0xf0]  ;;  %v1576_v55 = vld [vmem:[#allocation8 + $0xc8] sm:$0xf]  ;;  %v2077_v16 = vld [vmem:[#allocation10 + $0xb8] sm:$0xff] }
  0xe7   :  { %1050 = vmatmul.bf16.vlgmr.msrb.gmra.mxu2 %v2407_v1  ;;  %v1841_v63 = vor.u32 %v2050_v54, %v1840_v52  ;;  %v1963_v0 = vld [vmem:[#allocation8 + $0x28] sm:$0xf0]  ;;  %v498_v52 = vperm.slane %v99_v21, 0 }
  0xe8   :  { %1146 = vmatpush.bf16.msrb.mxu2 %v1757_v61  ;;  %v326_v13 = vmul.f32 %v2101_v43, %v325_v6  ;;  %v1697_v61 = vor.u32 %v2014_v49, %v1696_v48  ;;  %v1828_v6 = vld [vmem:[#allocation8 + $0x2c0] sm:$0xf]  ;;  %v1493_v8 = vor.u32 %v1963_v0, %v1492_v62 }
  0xe9   :  { %1135 = vmatpush.bf16.msrb.mxu1 %v1637_v5  ;;  %v1577_v5 = vor.u32 %v1984_v56, %v1576_v55  ;;  %v2062_v49 = vld [vmem:[#allocation10 + $0x40] sm:$0xff]  ;;  %v2073_v55 = vld [vmem:[#allocation10 + $0x98] sm:$0xff] }
  0xea   :  { %v330_v23 = vsel %vm329_vm13, %v2101_v43, %v326_v13  ;;  %1121 = vmatpush.bf16.msra.mxu0 %v1553_v7  ;;  %v1987_v43 = vld [vmem:[#allocation8 + $0xe8] sm:$0xf0]  ;;  %v1672_v13 = vld [vmem:[#allocation8 + $0x188] sm:$0xf] }
  0xeb   :  { %v334_v53 = vmul.f32 %v330_v23, %v2372_v59  ;;  %v1969_v59 = vld [vmem:[#allocation8 + $0x58] sm:$0xf0]  ;;  %v1589_v51 = vor.u32 %v1987_v43, %v1588_v42  ;;  %v2047_v7 = vld [vmem:[#allocation8 + $0x2c8] sm:$0xf0]  ;;  %v1673_v23 = vor.u32 %v2008_v14, %v1672_v13  ;;  %v2064_v43 = vld [vmem:[#allocation10 + $0x50] sm:$0xff] }
  0xec   :  { %1147 = vmatpush.bf16.msrb.mxu2 %v1745_v10  ;;  %v1517_v45 = vor.u32 %v1969_v59, %v1516_v37  ;;  %v1480_v10 = vld [vmem:[#allocation8 + $0x8] sm:$0xf]  ;;  %v1829_v11 = vor.u32 %v2047_v7, %v1828_v6  ;;  %v2068_v37 = vld [vmem:[#allocation10 + $0x70] sm:$0xff] }
  0xed   :  { %v347_v31 = vmul.f32 %v339_v19, %v334_v53  ;;  %1136 = vmatpush.bf16.msrb.mxu1 %v1625_v20  ;;  %v2044_v19 = vld [vmem:[#allocation8 + $0x2b0] sm:$0xf0]  ;;  %v1481_v20 = vor.u32 %v1960_v12, %v1480_v10  ;;  %v1805_v53 = vor.u32 %v2041_v26, %v1804_v24  ;;  %v2055_v59 = vld [vmem:[#allocation10 + $0x8] sm:$0xff]  ;;  %v2070_v10 = vld [vmem:[#allocation10 + $0x80] sm:$0xff] }
  0xee   :  { %1122 = vmatpush.bf16.msra.mxu0 %v1541_v18  ;;  %v1817_v18 = vor.u32 %v2044_v19, %v1816_v17 }
  0xef   :  { %v360_v36 = vadd.f32 %v352_v25, %v347_v31  ;;  %v1780_v25 = vld [vmem:[#allocation8 + $0x260] sm:$0xf]  ;;  %v2032_v31 = vld [vmem:[#allocation8 + $0x250] sm:$0xf0] }
  0xf0   :  { %1148 = vmatpush.bf16.msrb.mxu2 %v1733_v27  ;;  %1089 = vmatmul.bf16.vlgmr.msra.gmra.mxu1 %v2401_v40  ;;  %v1792_v27 = vld [vmem:[#allocation8 + $0x278] sm:$0xf] }
  0xf1   :  { %1137 = vmatpush.bf16.msrb.mxu1 %v1613_v30  ;;  %v364_v39 = vmax.f32 %v360_v36, 0.0  ;;  %v1793_v50 = vor.u32 %v2038_v22, %v1792_v27  ;;  %v1769_v30 = vor.u32 %v2032_v31, %v1768_v29  ;;  %v2056_v36 = vld [vmem:[#allocation10 + $0x10] sm:$0xff] }
  0xf2   :  { %1123 = vmatpush.bf16.msra.mxu0 %v1529_v32  ;;  %v2061_v32 = vld [vmem:[#allocation10 + $0x38] sm:$0xff] }
  0xf3   :  { %v2416_v44 = vpack.c.bf16 %v364_v39, %v364_v39 }
  0xf4   :  { %1149 = vmatpush.bf16.msrb.mxu2 %v1721_v35  ;;  %v2069_v35 = vld [vmem:[#allocation10 + $0x78] sm:$0xff] }
  0xf5   :  { %1138 = vmatpush.bf16.msrb.mxu1 %v1601_v4  ;;  %1063 = vmatmul.bf16.vlgmr.msra.gmra.mxu3 %v2416_v44  ;;  %v2066_v4 = vld [vmem:[#allocation10 + $0x60] sm:$0xff] }
  0xf6   :  { %1076 = vmatmul.bf16.vlgmr.msrb.gmra.mxu0 %v2405_v58  ;;  %1159 = vmatpush.bf16.msra.mxu3 %v1853_v47 }
  0xf7   :  { %1102 = vmatmul.bf16.vlgmr.msra.gmra.mxu2 %v2407_v1  ;;  %1124 = vmatpush.bf16.msra.mxu0 %v1517_v45 }
  0xf8   :  { %1150 = vmatpush.bf16.msrb.mxu2 %v1709_v46  ;;  %v2063_v46 = vld [vmem:[#allocation10 + $0x48] sm:$0xff] }
  0xf9   :  { %1139 = vmatpush.bf16.msrb.mxu1 %v1589_v51  ;;  %v2074_v51 = vld [vmem:[#allocation10 + $0xa0] sm:$0xff] }
  0xfa   :  { %1160 = vmatpush.bf16.msra.mxu3 %v1841_v63 }
  0xfb   :  { %1125 = vmatpush.bf16.msra.mxu0 %v1505_v57 }
  0xfc   :  { %1151 = vmatpush.bf16.msrb.mxu2 %v1697_v61  ;;  %v2072_v61 = vld [vmem:[#allocation10 + $0x90] sm:$0xff] }
  0xfd   :  { %1140 = vmatpush.bf16.msrb.mxu1 %v1577_v5  ;;  %v2071_v5 = vld [vmem:[#allocation10 + $0x88] sm:$0xff] }
  0xfe   :  { %1161 = vmatpush.bf16.msra.mxu3 %v1829_v11  ;;  %v499_v11 = vperm.slane %v99_v21, 1 }
  0xff   :  { %1126 = vmatpush.bf16.msra.mxu0 %v1493_v8 }
 0x100   :  { %1152 = vmatpush.bf16.msrb.mxu2 %v1685_v9  ;;  %1141 = vmatmul.bf16.vlgmr.msrb.gmra.mxu1 %v2401_v40  ;;  %v1781_v40 = vor.u32 %v2035_v28, %v1780_v25  ;;  %v500_v28 = vperm.slane %v99_v21, 2 }
 0x101   :  { %1386 = vmatpush.bf16.msra.mxu1 %v2069_v35 }
 0x102   :  { %1162 = vmatpush.bf16.msra.mxu3 %v1817_v18 }
 0x103   :  { %1127 = vmatpush.bf16.msra.mxu0 %v1481_v20 }
 0x104   :  { %1153 = vmatpush.bf16.msrb.mxu2 %v1673_v23 }
 0x105   :  { %1115 = vmatmul.bf16.vlgmr.msrb.gmra.mxu3 %v2416_v44  ;;  %1387 = vmatpush.bf16.msra.mxu1 %v2068_v37 }
 0x106   :  { %1128 = vmatmul.bf16.vlgmr.msra.gmra.mxu0 %v2405_v58  ;;  %1163 = vmatpush.bf16.msra.mxu3 %v1805_v53  ;;  %v2059_v58 = vld [vmem:[#allocation10 + $0x28] sm:$0xff] }
 0x107   :  { %1154 = vmatmul.bf16.vlgmr.msrb.gmra.mxu2 %v2407_v1  ;;  %1373 = vmatpush.bf16.msrb.mxu0 %v2061_v32  ;;  %v2058_v1 = vld [vmem:[#allocation10 + $0x20] sm:$0xff] }
 0x108   :  { %1399 = vmatpush.bf16.msra.mxu2 %v2077_v16 }
 0x109   :  { %1388 = vmatpush.bf16.msra.mxu1 %v2067_v38 }
 0x10a   :  { %1164 = vmatpush.bf16.msra.mxu3 %v1793_v50 }
 0x10b   :  { %1374 = vmatpush.bf16.msrb.mxu0 %v2060_v33 }
 0x10d   :  { %1389 = vmatpush.bf16.msra.mxu1 %v2066_v4 }
 0x10e   :  { %1165 = vmatpush.bf16.msra.mxu3 %v1781_v40 }
 0x10f   :  { %1375 = vmatpush.bf16.msrb.mxu0 %v2059_v58 }
 0x111   :  { %1390 = vmatpush.bf16.msra.mxu1 %v2065_v41 }
 0x112   :  { %1166 = vmatpush.bf16.msra.mxu3 %v1769_v30 }
 0x113   :  { %1376 = vmatpush.bf16.msrb.mxu0 %v2058_v1 }
 0x115   :  { %1167 = vmatmul.bf16.vlgmr.msra.gmra.mxu3 %v2416_v44  ;;  %v2076_v44 = vld [vmem:[#allocation10 + $0xb0] sm:$0xff]  ;;  %1391 = vmatpush.bf16.msra.mxu1 %v2064_v43 }
 0x116   :  { %1400 = vmatpush.bf16.msra.mxu2 %v2076_v44 }
 0x117   :  { %1377 = vmatpush.bf16.msrb.mxu0 %v2057_v34 }
 0x119   :  { %1392 = vmatpush.bf16.msra.mxu1 %v2063_v46 }
 0x11a   :  { %1401 = vmatpush.bf16.msra.mxu2 %v2075_v15 }
 0x11b   :  { %1378 = vmatpush.bf16.msrb.mxu0 %v2056_v36 }
 0x11d   :  { %1393 = vmatpush.bf16.msra.mxu1 %v2062_v49 }
 0x11e   :  { %1402 = vmatpush.bf16.msra.mxu2 %v2074_v51 }
 0x11f   :  { %1379 = vmatpush.bf16.msrb.mxu0 %v2055_v59 }
 0x122   :  { %1403 = vmatpush.bf16.msra.mxu2 %v2073_v55 }
 0x123   :  { %1380 = vmatpush.bf16.msrb.mxu0 %v2054_v60  ;;  %v2091_v60 = vld [vmem:[#allocation7 + $0xf] ss:$0 sm:$0xff] }
 0x126   :  { %1404 = vmatpush.bf16.msra.mxu2 %v2072_v61 }
 0x12a   :  { %1405 = vmatpush.bf16.msra.mxu2 %v2071_v5 }
 0x12e   :  { %1406 = vmatpush.bf16.msra.mxu2 %v2070_v10 }
 0x15d   :  { %v1038_v39 = vpop.f32.mrf.mxu1 }
 0x162   :  { %v1025_v42 = vpop.f32.mrf.mxu0 }
 0x163   :  { %v1026_v56 = vadd.f32 %v1025_v42, %v498_v52 }
 0x165   :  { %v1040_v45 = vpop.f32.mrf.mxu1  ;;  %v1039_v63 = vadd.f32 %v1038_v39, %v1026_v56 }
 0x16a   :  { %v1051_v47 = vpop.f32.mrf.mxu2  ;;  %v1027_v48 = vpop.f32.mrf.mxu0 }
 0x16b   :  { %v1052_v2 = vadd.f32 %v1051_v47, %v1039_v63 }
 0x16d   :  { %v1090_v54 = vpop.f32.mrf.mxu1 }
 0x172   :  { %v1053_v57 = vpop.f32.mrf.mxu2 }
 0x173   :  { %v1077_v62 = vpop.f32.mrf.mxu0 }
 0x174   :  { %v1078_v17 = vadd.f32 %v1077_v62, %v499_v11 }
 0x175   :  { %v1092_v0 = vpop.f32.mrf.mxu1 }
 0x176   :  { %v1091_v23 = vadd.f32 %v1090_v54, %v1078_v17 }
 0x178   :  { %v1064_v3 = vpop.f32.mrf.mxu3 }
 0x179   :  { %v1065_v6 = vadd.f32 %v1064_v3, %v1052_v2 }
 0x17a   :  { %v1103_v7 = vpop.f32.mrf.mxu2 }
 0x17b   :  { %v1172_v8 = vmax.f32 %v1065_v6, 0.0  ;;  %v1079_v9 = vpop.f32.mrf.mxu0  ;;  %v1104_v24 = vadd.f32 %v1103_v7, %v1091_v23 }
 0x17d   :  { %v1175_v12 = vpack.c.bf16 %v1172_v8, %v1172_v8  ;;  %v1142_v13 = vpop.f32.mrf.mxu1 }
 0x17f   :  { %1381 = vmatmul.bf16.vlgmr.msrb.gmra.mxu0 %v1175_v12 }
 0x180   :  { %v1066_v14 = vpop.f32.mrf.mxu3 }
 0x182   :  { %v1105_v19 = vpop.f32.mrf.mxu2 }
 0x183   :  { %v1129_v20 = vpop.f32.mrf.mxu0 }
 0x184   :  { %v1130_v31 = vadd.f32 %v1129_v20, %v500_v28 }
 0x185   :  { %v1144_v18 = vpop.f32.mrf.mxu1 }
 0x186   :  { %v1143_v30 = vadd.f32 %v1142_v13, %v1130_v31 }
 0x188   :  { %v1116_v26 = vpop.f32.mrf.mxu3 }
 0x189   :  { %v1117_v53 = vadd.f32 %v1116_v26, %v1104_v24 }
 0x18a   :  { %v1155_v27 = vpop.f32.mrf.mxu2 }
 0x18b   :  { %v1173_v22 = vmax.f32 %v1117_v53, 0.0  ;;  %v1131_v50 = vpop.f32.mrf.mxu0  ;;  %v1156_v32 = vadd.f32 %v1155_v27, %v1143_v30 }
 0x18d   :  { %v1176_v25 = vpack.c.bf16 %v1173_v22, %v1173_v22 }
 0x18f   :  { %1394 = vmatmul.bf16.vlgmr.msra.gmra.mxu1 %v1176_v25 }
 0x190   :  { %v1118_v40 = vpop.f32.mrf.mxu3 }
 0x192   :  { %v1157_v29 = vpop.f32.mrf.mxu2 }
 0x198   :  { %v1168_v33 = vpop.f32.mrf.mxu3 }
 0x199   :  { %v1169_v58 = vadd.f32 %v1168_v33, %v1156_v32 }
 0x19b   :  { %v1174_v1 = vmax.f32 %v1169_v58, 0.0 }
 0x19d   :  { %v1177_v34 = vpack.c.bf16 %v1174_v1, %v1174_v1 }
 0x19f   :  { %1407 = vmatmul.bf16.vlgmr.msra.gmra.mxu2 %v1177_v34 }
 0x1a0   :  { %v1170_v35 = vpop.f32.mrf.mxu3 }
 0x1fc   :  { %v1382_v36 = vpop.f32.mrf.mxu0 }
 0x1fd   :  { %v1383_v4 = vadd.f32 %v2091_v60, %v1382_v36 }
 0x204   :  { %v1384_v37 = vpop.f32.mrf.mxu0 }
 0x20c   :  { %v1395_v59 = vpop.f32.mrf.mxu1 }
 0x20d   :  { %v1396_v39 = vadd.f32 %v1395_v59, %v1383_v4 }
 0x214   :  { %v1397_v38 = vpop.f32.mrf.mxu1 }
 0x222   :  { %v1408_v41 = vpop.f32.mrf.mxu2 }
 0x223   :  { %v1409_v16 = vadd.f32 %v1408_v41, %v1396_v39 }
 0x225   :  { %2102 = vtanh.f32 %v1409_v16 }
 0x22a   :  { %v1410_v42 = vpop.f32.mrf.mxu2 }
 0x22b   :  { %v2103_v43 = vpop.eup %2102 }
 0x22c   :  { %v1413_v44 = vpack.c.bf16 %v2103_v43, %v2103_v43 }
 0x22e   :  { %1414 = vst [vmem:[#allocation11] sm:$0xf] %v1413_v44 }
 0x22f   :  { %1425 = dma.vmem_to_hbm [thread:$0]  %s1421_s4, 64, %s1423_s23, [#allocation4]  }
 0x230   :  { %2254 = dma.done.wait [#allocation4], 64  }
 0x231   :  { %2255 = vsyncadd [#allocation4], 4294967232 }
 0x232   :  { %1430 = vsyncpa [#allocation3], 1 }
 0x233   :  { %1431 = vsyncpa [#allocation6], 1 }
 0x234   :  { %1432 = vsyncpa [#allocation9], 1 }
 0x235   :  { %1433 = vsyncpa [#allocation4], 1 }

</bundles_post_ra>
